<compile_context>
chip_gen: v6e
topology: v6e:2x2x1
jax: 0.10.0
libtpu: 0.0.40
codegen_flags: <defaults>
</compile_context>

<pallas_src>
import functools

import jax
import jax.numpy as jnp
from jax import lax
from jax.experimental import pallas as pl
from jax.experimental.pallas import tpu as pltpu

LEAK = 0.2
BN_EPS = 1e-5


def _leaky_relu(x):
    # max-form: one mul + one max (cheaper than cmp+select+mul on the VPU).
    return jnp.maximum(x, LEAK * x)


def _round_up(x, m):
    return ((x + m - 1) // m) * m


def _conv1(x_ref, w1_ref, b1_ref, cin):
    """conv1 as Cin VPU broadcast-FMAs (K=Cin is tiny), then LeakyReLU. -> (ndf, TILE_P) f32."""
    x = x_ref[...]                                     # (cin, TILE_P) f32
    w1 = w1_ref[...]                                   # (ndf, cin)    f32
    h1 = b1_ref[...] + w1[:, 0:1] * x[0:1, :]          # (ndf, TILE_P)
    for c in range(1, cin):
        h1 = h1 + w1[:, c:c + 1] * x[c:c + 1, :]
    return _leaky_relu(h1)


def _stats_kernel(x_ref, w1_ref, b1_ref, sum_ref, gram_ref, *, cin):
    """Pass 1: accumulate sum(h1) and the Gram matrix G = h1 @ h1^T over pixel tiles.

    conv2 is applied analytically in the wrapper (s1 = W2 sum(h1), s2 = diag(W2 G W2^T)),
    so the dominant matmul here is the K=TILE_P Gram contraction on the MXU.
    """
    @pl.when(pl.program_id(1) == 0)
    def _():
        sum_ref[...] = jnp.zeros_like(sum_ref)
        gram_ref[...] = jnp.zeros_like(gram_ref)

    h1 = _conv1(x_ref, w1_ref, b1_ref, cin)            # (ndf, TILE_P) f32
    sum_ref[0] += jnp.sum(h1, axis=1, keepdims=True)   # (ndf, 1)
    # Contract on the lane axis (no explicit transpose): (ndf, T) x (ndf, T) -> (ndf, ndf).
    gram_ref[0] += lax.dot_general(h1, h1, (((1,), (1,)), ((), ())),
                                   preferred_element_type=jnp.float32)


def _out_kernel(x_ref, w1_ref, b1_ref, w2f_ref, shift_ref, w3_ref, o_ref, *, cin):
    """Pass 2: conv1, BN-folded conv2 (+shift), LeakyReLU, conv3; lane-dense store."""
    h1 = _conv1(x_ref, w1_ref, b1_ref, cin)             # (ndf,  TILE_P)
    # conv2 with BN scale pre-folded into the weight; shift is the folded BN bias.
    h3 = _leaky_relu(jnp.dot(w2f_ref[...], h1, preferred_element_type=jnp.float32)
                     + shift_ref[...])                  # (ndf2, TILE_P)
    # conv3 (single output channel): VPU multiply + sublane reduce -> (1, TILE_P).
    o_ref[...] = jnp.sum(h3 * w3_ref[...], axis=0, keepdims=True).astype(o_ref.dtype)


def pixel_discriminator(x_nchw, params):
    """x_nchw: (N, Cin, H, W) float32. Returns (N, 1, H, W) float32."""
    w1, b1, w2, gamma, beta, w3 = params
    N, Cin, H, W = x_nchw.shape
    ndf = w1.shape[1]
    ndf2 = w2.shape[1]
    P = N * H * W

    # Big lane tiles: per-tile working set at TILE_P=8192 is ~6-8 MiB (x 128 KiB dbl-buffered,
    # h1 2 MiB, h3 4 MiB), under the 32 MiB default scoped VMEM and v7x's 64 MiB physical.
    tile_p = 8192
    if P < tile_p:
        tile_p = max(128, _round_up(P, 128))
    p_pad = _round_up(P, tile_p)
    num_tiles = p_pad // tile_p
    npad = p_pad - P

    # Channels-first, pixels lane-dense: (Cin, P) with p = n*H*W + h*W + w.
    x_t = jnp.transpose(x_nchw, (1, 0, 2, 3)).reshape(Cin, P).astype(jnp.float32)
    if npad:
        x_t = jnp.pad(x_t, ((0, 0), (0, npad)))

    w1_t = jnp.transpose(w1)                          # (ndf,  Cin)  f32
    b1_c = jnp.reshape(b1, (ndf, 1))                  # (ndf,  1)
    w2_t = jnp.transpose(w2).astype(jnp.float32)      # (ndf2, ndf)  f32
    gamma_c = jnp.reshape(gamma, (ndf2, 1))
    beta_c = jnp.reshape(beta, (ndf2, 1))
    w3_c = jnp.reshape(w3, (ndf2, 1))                 # (ndf2, 1)

    # ---- Pass 1: sum(h1) and Gram(h1) per pixel tile, split over TensorCores on v7x. ----
    n_split = 2 if (num_tiles >= 2 and num_tiles % 2 == 0) else 1
    tiles_per_split = num_tiles // n_split

    x_spec1 = pl.BlockSpec((Cin, tile_p), lambda c, i: (0, c * tiles_per_split + i))
    sums, grams = pl.pallas_call(
        functools.partial(_stats_kernel, cin=Cin),
        out_shape=(jax.ShapeDtypeStruct((n_split, ndf, 1), jnp.float32),
                   jax.ShapeDtypeStruct((n_split, ndf, ndf), jnp.float32)),
        grid=(n_split, tiles_per_split),
        in_specs=[x_spec1,
                  pl.BlockSpec((ndf, Cin), lambda c, i: (0, 0)),
                  pl.BlockSpec((ndf, 1), lambda c, i: (0, 0))],
        out_specs=(pl.BlockSpec((1, ndf, 1), lambda c, i: (c, 0, 0)),
                   pl.BlockSpec((1, ndf, ndf), lambda c, i: (c, 0, 0))),
        compiler_params=pltpu.CompilerParams(
            dimension_semantics=("parallel", "arbitrary")),
    )(x_t, w1_t, b1_c)

    # Reduce per-core partials; correct analytically for the all-zero pad columns,
    # each of which contributes h1_pad = leaky(b1).
    sum_h1 = jnp.sum(sums, axis=0)                    # (ndf, 1)
    gram = jnp.sum(grams, axis=0)                     # (ndf, ndf)
    if npad:
        h1_pad = _leaky_relu(b1_c)                    # (ndf, 1)
        sum_h1 = sum_h1 - npad * h1_pad
        gram = gram - npad * (h1_pad @ h1_pad.T)

    # conv2 applied algebraically to the statistics (all f32):
    #   s1[o] = sum_p h2[o,p] = W2 @ sum(h1);   s2[o] = sum_p h2[o,p]^2 = (W2 G W2^T)[o,o].
    s1 = w2_t @ sum_h1                                # (ndf2, 1)
    s2 = jnp.sum((w2_t @ gram) * w2_t, axis=1, keepdims=True)   # (ndf2, 1)

    # Training-mode BatchNorm fold (biased variance) -> per-channel scale/shift.
    mean = s1 / P
    var = jnp.maximum(s2 / P - mean * mean, 0.0)
    inv_std = lax.rsqrt(var + BN_EPS)
    scale = gamma_c * inv_std                         # (ndf2, 1)
    shift = beta_c - mean * scale                     # (ndf2, 1)
    w2_fold = scale * w2_t                            # BN scale folded into conv2 weight

    # ---- Pass 2: conv1 -> folded conv2+BN -> LeakyReLU -> conv3; 'parallel' over tiles. ----
    out_flat = pl.pallas_call(
        functools.partial(_out_kernel, cin=Cin),
        out_shape=jax.ShapeDtypeStruct((1, p_pad), jnp.float32),
        grid=(num_tiles,),
        in_specs=[pl.BlockSpec((Cin, tile_p), lambda i: (0, i)),
                  pl.BlockSpec((ndf, Cin), lambda i: (0, 0)),
                  pl.BlockSpec((ndf, 1), lambda i: (0, 0)),
                  pl.BlockSpec((ndf2, ndf), lambda i: (0, 0)),
                  pl.BlockSpec((ndf2, 1), lambda i: (0, 0)),
                  pl.BlockSpec((ndf2, 1), lambda i: (0, 0))],
        out_specs=pl.BlockSpec((1, tile_p), lambda i: (0, i)),
        compiler_params=pltpu.CompilerParams(
            dimension_semantics=("parallel",)),
    )(x_t, w1_t, b1_c, w2_fold, shift, w3_c)

    # (1, P) -> (N, 1, H, W)
    return out_flat[:, :P].reshape(N, H, W)[:, None, :, :]


def reference_forward(x_nchw, params):
    """Pure-JAX f32 reference mirroring the PyTorch module (training-mode BN)."""
    w1, b1, w2, gamma, beta, w3 = params
    N, Cin, H, W = x_nchw.shape
    x = jnp.transpose(x_nchw, (0, 2, 3, 1)).reshape(-1, Cin)
    h1 = _leaky_relu(x @ w1 + b1)
    h2 = h1 @ w2
    mean = jnp.mean(h2, axis=0, keepdims=True)
    var = jnp.mean((h2 - mean) ** 2, axis=0, keepdims=True)
    h3 = _leaky_relu((h2 - mean) / jnp.sqrt(var + BN_EPS) * gamma + beta)
    out = h3 @ w3
    return jnp.transpose(out.reshape(N, H, W, 1), (0, 3, 1, 2))


def init_params(key, input_nc, ndf):
    """Deterministic synthetic parameters (shapes match the PyTorch module)."""
    k1, k2, k3, k4 = jax.random.split(key, 4)
    # Conv weights stored as (Cin, Cout) since kernels are 1x1.
    w1 = 0.05 * jax.random.normal(k1, (input_nc, ndf), jnp.float32)
    b1 = 0.01 * jax.random.normal(k2, (1, ndf), jnp.float32)
    w2 = 0.05 * jax.random.normal(k3, (ndf, 2 * ndf), jnp.float32)
    gamma = jnp.ones((1, 2 * ndf), jnp.float32)
    beta = jnp.zeros((1, 2 * ndf), jnp.float32)
    w3 = 0.05 * jax.random.normal(k4, (2 * ndf, 1), jnp.float32)
    return (w1, b1, w2, gamma, beta, w3)


if __name__ == "__main__":
    key = jax.random.PRNGKey(0)
    kx, kp = jax.random.split(key)

    N, input_nc, H, W = 2, 4, 16, 16
    ndf = 64

    x = jax.random.normal(kx, (N, input_nc, H, W), jnp.float32)
    params = init_params(kp, input_nc, ndf)

    fwd = jax.jit(pixel_discriminator)
    out = jax.block_until_ready(fwd(x, params))

    ref = reference_forward(x, params)
    assert out.shape == (N, 1, H, W), out.shape
    max_err = float(jnp.max(jnp.abs(out - ref)))
    assert jnp.allclose(out, ref, atol=1e-3, rtol=1e-3), max_err

    print("KERNEL_OK")
</pallas_src>

<mosaic_0001>
module attributes {stable_mosaic.version = 11 : i64} {
  func.func @_stats_kernel(%arg0: i32, %arg1: i32, %arg2: memref<4x512xf32, #tpu.memory_space<vmem>>, %arg3: memref<64x4xf32, #tpu.memory_space<vmem>>, %arg4: memref<64x1xf32, #tpu.memory_space<vmem>>, %arg5: memref<1x64x1xf32, #tpu.memory_space<vmem>>, %arg6: memref<1x64x64xf32, #tpu.memory_space<vmem>>) attributes {dimension_semantics = [#tpu.dimension_semantics<parallel>, #tpu.dimension_semantics<arbitrary>], iteration_bounds = array<i64: 1, 1>, scalar_prefetch = 0 : i64, scratch_operands = 0 : i64, tpu.core_type = #tpu.core_type<tc>, window_params = [{transform_indices = @transform_0, window_bounds = array<i64: 4, 512>}, {pipeline_mode = #tpu.pipeline_mode<synchronous>, transform_indices = @transform_1, window_bounds = array<i64: 64, 4>}, {pipeline_mode = #tpu.pipeline_mode<synchronous>, transform_indices = @transform_2, window_bounds = array<i64: 64, 1>}, {transform_indices = @transform_3, window_bounds = array<i64: 1, 64, 1>}, {transform_indices = @transform_4, window_bounds = array<i64: 1, 64, 64>}]} {
    %c0_i32 = arith.constant 0 : i32
    %0 = arith.cmpi eq, %arg1, %c0_i32 : i32
    %1 = arith.extui %0 : i1 to i32
    %c0_i32_0 = arith.constant 0 : i32
    %2 = arith.cmpi ne, %1, %c0_i32_0 : i32
    scf.if %2 {
      %cst_20 = arith.constant 0.000000e+00 : f32
      %49 = vector.broadcast %cst_20 : f32 to vector<1x64x1xf32>
      %c0_21 = arith.constant 0 : index
      %c0_22 = arith.constant 0 : index
      %c0_23 = arith.constant 0 : index
      %50 = vector.load %arg5[%c0_21, %c0_22, %c0_23] : memref<1x64x1xf32, #tpu.memory_space<vmem>>, vector<1x64x1xf32>
      tpu.vector_store %arg5[%c0_21, %c0_22, %c0_23], %49 {strides = array<i32>} : memref<1x64x1xf32, #tpu.memory_space<vmem>>, vector<1x64x1xf32>,
      %cst_24 = arith.constant 0.000000e+00 : f32
      %51 = vector.broadcast %cst_24 : f32 to vector<1x64x64xf32>
      %c0_25 = arith.constant 0 : index
      %c0_26 = arith.constant 0 : index
      %c0_27 = arith.constant 0 : index
      %52 = vector.load %arg6[%c0_25, %c0_26, %c0_27] : memref<1x64x64xf32, #tpu.memory_space<vmem>>, vector<1x64x64xf32>
      tpu.vector_store %arg6[%c0_25, %c0_26, %c0_27], %51 {strides = array<i32>} : memref<1x64x64xf32, #tpu.memory_space<vmem>>, vector<1x64x64xf32>,
    } else {
    }
    %c0 = arith.constant 0 : index
    %c0_1 = arith.constant 0 : index
    %3 = vector.load %arg2[%c0, %c0_1] : memref<4x512xf32, #tpu.memory_space<vmem>>, vector<4x512xf32>
    %c0_2 = arith.constant 0 : index
    %c0_3 = arith.constant 0 : index
    %4 = vector.load %arg3[%c0_2, %c0_3] : memref<64x4xf32, #tpu.memory_space<vmem>>, vector<64x4xf32>
    %c0_4 = arith.constant 0 : index
    %c0_5 = arith.constant 0 : index
    %5 = vector.load %arg4[%c0_4, %c0_5] : memref<64x1xf32, #tpu.memory_space<vmem>>, vector<64x1xf32>
    %6 = vector.extract_strided_slice %4 {offsets = [0, 0], sizes = [64, 1], strides = [1, 1]} : vector<64x4xf32> to vector<64x1xf32>
    %7 = vector.extract_strided_slice %3 {offsets = [0, 0], sizes = [1, 512], strides = [1, 1]} : vector<4x512xf32> to vector<1x512xf32>
    %8 = vector.broadcast %6 : vector<64x1xf32> to vector<64x512xf32>
    %9 = vector.broadcast %7 : vector<1x512xf32> to vector<64x512xf32>
    %10 = arith.mulf %8, %9 : vector<64x512xf32>
    %11 = vector.broadcast %5 : vector<64x1xf32> to vector<64x512xf32>
    %12 = arith.addf %11, %10 : vector<64x512xf32>
    %13 = vector.extract_strided_slice %4 {offsets = [0, 1], sizes = [64, 1], strides = [1, 1]} : vector<64x4xf32> to vector<64x1xf32>
    %14 = vector.extract_strided_slice %3 {offsets = [1, 0], sizes = [1, 512], strides = [1, 1]} : vector<4x512xf32> to vector<1x512xf32>
    %15 = vector.broadcast %13 : vector<64x1xf32> to vector<64x512xf32>
    %16 = vector.broadcast %14 : vector<1x512xf32> to vector<64x512xf32>
    %17 = arith.mulf %15, %16 : vector<64x512xf32>
    %18 = arith.addf %12, %17 : vector<64x512xf32>
    %19 = vector.extract_strided_slice %4 {offsets = [0, 2], sizes = [64, 1], strides = [1, 1]} : vector<64x4xf32> to vector<64x1xf32>
    %20 = vector.extract_strided_slice %3 {offsets = [2, 0], sizes = [1, 512], strides = [1, 1]} : vector<4x512xf32> to vector<1x512xf32>
    %21 = vector.broadcast %19 : vector<64x1xf32> to vector<64x512xf32>
    %22 = vector.broadcast %20 : vector<1x512xf32> to vector<64x512xf32>
    %23 = arith.mulf %21, %22 : vector<64x512xf32>
    %24 = arith.addf %18, %23 : vector<64x512xf32>
    %25 = vector.extract_strided_slice %4 {offsets = [0, 3], sizes = [64, 1], strides = [1, 1]} : vector<64x4xf32> to vector<64x1xf32>
    %26 = vector.extract_strided_slice %3 {offsets = [3, 0], sizes = [1, 512], strides = [1, 1]} : vector<4x512xf32> to vector<1x512xf32>
    %27 = vector.broadcast %25 : vector<64x1xf32> to vector<64x512xf32>
    %28 = vector.broadcast %26 : vector<1x512xf32> to vector<64x512xf32>
    %29 = arith.mulf %27, %28 : vector<64x512xf32>
    %30 = arith.addf %24, %29 : vector<64x512xf32>
    %cst = arith.constant 2.000000e-01 : f32
    %31 = vector.broadcast %cst : f32 to vector<64x512xf32>
    %32 = arith.mulf %31, %30 : vector<64x512xf32>
    %33 = arith.maximumf %30, %32 : vector<64x512xf32>
    %c0_6 = arith.constant 0 : index
    %c0_7 = arith.constant 0 : index
    %c0_8 = arith.constant 0 : index
    %34 = vector.load %arg5[%c0_6, %c0_7, %c0_8] : memref<1x64x1xf32, #tpu.memory_space<vmem>>, vector<1x64x1xf32>
    %35 = vector.shape_cast %34 : vector<1x64x1xf32> to vector<64x1xf32>
    %cst_9 = arith.constant dense<0.000000e+00> : vector<64xf32>
    %36 = vector.multi_reduction <add>, %33, %cst_9 [1] : vector<64x512xf32> to vector<64xf32>
    %37 = vector.shape_cast %36 : vector<64xf32> to vector<64x1xf32>
    %38 = arith.addf %35, %37 : vector<64x1xf32>
    %c0_10 = arith.constant 0 : index
    %c0_11 = arith.constant 0 : index
    %c0_12 = arith.constant 0 : index
    %39 = vector.load %arg5[%c0_10, %c0_11, %c0_12] : memref<1x64x1xf32, #tpu.memory_space<vmem>>, vector<1x64x1xf32>
    %40 = vector.shape_cast %39 : vector<1x64x1xf32> to vector<64x1xf32>
    %41 = vector.shape_cast %38 : vector<64x1xf32> to vector<1x64x1xf32>
    tpu.vector_store %arg5[%c0_10, %c0_11, %c0_12], %41 {strides = array<i32>} : memref<1x64x1xf32, #tpu.memory_space<vmem>>, vector<1x64x1xf32>,
    %c0_13 = arith.constant 0 : index
    %c0_14 = arith.constant 0 : index
    %c0_15 = arith.constant 0 : index
    %42 = vector.load %arg6[%c0_13, %c0_14, %c0_15] : memref<1x64x64xf32, #tpu.memory_space<vmem>>, vector<1x64x64xf32>
    %43 = vector.shape_cast %42 : vector<1x64x64xf32> to vector<64x64xf32>
    %cst_16 = arith.constant dense<0.000000e+00> : vector<64x64xf32>
    %44 = tpu.matmul %33, %33, %cst_16 {dimension_numbers = #tpu.dot_dimension_numbers<[1], [1], [0], [0], [0, 0, 1, 0], [], []>} : vector<64x512xf32>, vector<64x512xf32>, vector<64x64xf32> -> vector<64x64xf32>
    %45 = arith.addf %43, %44 : vector<64x64xf32>
    %c0_17 = arith.constant 0 : index
    %c0_18 = arith.constant 0 : index
    %c0_19 = arith.constant 0 : index
    %46 = vector.load %arg6[%c0_17, %c0_18, %c0_19] : memref<1x64x64xf32, #tpu.memory_space<vmem>>, vector<1x64x64xf32>
    %47 = vector.shape_cast %46 : vector<1x64x64xf32> to vector<64x64xf32>
    %48 = vector.shape_cast %45 : vector<64x64xf32> to vector<1x64x64xf32>
    tpu.vector_store %arg6[%c0_17, %c0_18, %c0_19], %48 {strides = array<i32>} : memref<1x64x64xf32, #tpu.memory_space<vmem>>, vector<1x64x64xf32>,
    return
  }
  func.func @transform_0(%arg0: i32, %arg1: i32) -> (i32, i32) {
    %c1_i32 = arith.constant 1 : i32
    %0 = arith.muli %arg0, %c1_i32 : i32
    %1 = arith.addi %0, %arg1 : i32
    %c0_i32 = arith.constant 0 : i32
    %c0_i32_0 = arith.constant 0 : i32
    return %c0_i32, %1 : i32, i32
  }
  func.func @transform_1(%arg0: i32, %arg1: i32) -> (i32, i32) {
    %c0_i32 = arith.constant 0 : i32
    %c0_i32_0 = arith.constant 0 : i32
    %c0_i32_1 = arith.constant 0 : i32
    return %c0_i32, %c0_i32_0 : i32, i32
  }
  func.func @transform_2(%arg0: i32, %arg1: i32) -> (i32, i32) {
    %c0_i32 = arith.constant 0 : i32
    %c0_i32_0 = arith.constant 0 : i32
    %c0_i32_1 = arith.constant 0 : i32
    return %c0_i32, %c0_i32_0 : i32, i32
  }
  func.func @transform_3(%arg0: i32, %arg1: i32) -> (i32, i32, i32) {
    %c0_i32 = arith.constant 0 : i32
    %c0_i32_0 = arith.constant 0 : i32
    %c0_i32_1 = arith.constant 0 : i32
    return %arg0, %c0_i32, %c0_i32_0 : i32, i32, i32
  }
  func.func @transform_4(%arg0: i32, %arg1: i32) -> (i32, i32, i32) {
    %c0_i32 = arith.constant 0 : i32
    %c0_i32_0 = arith.constant 0 : i32
    %c0_i32_1 = arith.constant 0 : i32
    return %arg0, %c0_i32, %c0_i32_0 : i32, i32, i32
  }
}

module attributes {stable_mosaic.version = 11 : i64} {
  func.func @_out_kernel(%arg0: i32, %arg1: memref<4x512xf32, #tpu.memory_space<vmem>>, %arg2: memref<64x4xf32, #tpu.memory_space<vmem>>, %arg3: memref<64x1xf32, #tpu.memory_space<vmem>>, %arg4: memref<128x64xf32, #tpu.memory_space<vmem>>, %arg5: memref<128x1xf32, #tpu.memory_space<vmem>>, %arg6: memref<128x1xf32, #tpu.memory_space<vmem>>, %arg7: memref<1x512xf32, #tpu.memory_space<vmem>>) attributes {dimension_semantics = [#tpu.dimension_semantics<parallel>], iteration_bounds = array<i64: 1>, scalar_prefetch = 0 : i64, scratch_operands = 0 : i64, tpu.core_type = #tpu.core_type<tc>, window_params = [{transform_indices = @transform_0, window_bounds = array<i64: 4, 512>}, {pipeline_mode = #tpu.pipeline_mode<synchronous>, transform_indices = @transform_1, window_bounds = array<i64: 64, 4>}, {pipeline_mode = #tpu.pipeline_mode<synchronous>, transform_indices = @transform_2, window_bounds = array<i64: 64, 1>}, {pipeline_mode = #tpu.pipeline_mode<synchronous>, transform_indices = @transform_3, window_bounds = array<i64: 128, 64>}, {pipeline_mode = #tpu.pipeline_mode<synchronous>, transform_indices = @transform_4, window_bounds = array<i64: 128, 1>}, {pipeline_mode = #tpu.pipeline_mode<synchronous>, transform_indices = @transform_5, window_bounds = array<i64: 128, 1>}, {transform_indices = @transform_6, window_bounds = array<i64: 1, 512>}]} {
    %c0 = arith.constant 0 : index
    %c0_0 = arith.constant 0 : index
    %0 = vector.load %arg1[%c0, %c0_0] : memref<4x512xf32, #tpu.memory_space<vmem>>, vector<4x512xf32>
    %c0_1 = arith.constant 0 : index
    %c0_2 = arith.constant 0 : index
    %1 = vector.load %arg2[%c0_1, %c0_2] : memref<64x4xf32, #tpu.memory_space<vmem>>, vector<64x4xf32>
    %c0_3 = arith.constant 0 : index
    %c0_4 = arith.constant 0 : index
    %2 = vector.load %arg3[%c0_3, %c0_4] : memref<64x1xf32, #tpu.memory_space<vmem>>, vector<64x1xf32>
    %3 = vector.extract_strided_slice %1 {offsets = [0, 0], sizes = [64, 1], strides = [1, 1]} : vector<64x4xf32> to vector<64x1xf32>
    %4 = vector.extract_strided_slice %0 {offsets = [0, 0], sizes = [1, 512], strides = [1, 1]} : vector<4x512xf32> to vector<1x512xf32>
    %5 = vector.broadcast %3 : vector<64x1xf32> to vector<64x512xf32>
    %6 = vector.broadcast %4 : vector<1x512xf32> to vector<64x512xf32>
    %7 = arith.mulf %5, %6 : vector<64x512xf32>
    %8 = vector.broadcast %2 : vector<64x1xf32> to vector<64x512xf32>
    %9 = arith.addf %8, %7 : vector<64x512xf32>
    %10 = vector.extract_strided_slice %1 {offsets = [0, 1], sizes = [64, 1], strides = [1, 1]} : vector<64x4xf32> to vector<64x1xf32>
    %11 = vector.extract_strided_slice %0 {offsets = [1, 0], sizes = [1, 512], strides = [1, 1]} : vector<4x512xf32> to vector<1x512xf32>
    %12 = vector.broadcast %10 : vector<64x1xf32> to vector<64x512xf32>
    %13 = vector.broadcast %11 : vector<1x512xf32> to vector<64x512xf32>
    %14 = arith.mulf %12, %13 : vector<64x512xf32>
    %15 = arith.addf %9, %14 : vector<64x512xf32>
    %16 = vector.extract_strided_slice %1 {offsets = [0, 2], sizes = [64, 1], strides = [1, 1]} : vector<64x4xf32> to vector<64x1xf32>
    %17 = vector.extract_strided_slice %0 {offsets = [2, 0], sizes = [1, 512], strides = [1, 1]} : vector<4x512xf32> to vector<1x512xf32>
    %18 = vector.broadcast %16 : vector<64x1xf32> to vector<64x512xf32>
    %19 = vector.broadcast %17 : vector<1x512xf32> to vector<64x512xf32>
    %20 = arith.mulf %18, %19 : vector<64x512xf32>
    %21 = arith.addf %15, %20 : vector<64x512xf32>
    %22 = vector.extract_strided_slice %1 {offsets = [0, 3], sizes = [64, 1], strides = [1, 1]} : vector<64x4xf32> to vector<64x1xf32>
    %23 = vector.extract_strided_slice %0 {offsets = [3, 0], sizes = [1, 512], strides = [1, 1]} : vector<4x512xf32> to vector<1x512xf32>
    %24 = vector.broadcast %22 : vector<64x1xf32> to vector<64x512xf32>
    %25 = vector.broadcast %23 : vector<1x512xf32> to vector<64x512xf32>
    %26 = arith.mulf %24, %25 : vector<64x512xf32>
    %27 = arith.addf %21, %26 : vector<64x512xf32>
    %cst = arith.constant 2.000000e-01 : f32
    %28 = vector.broadcast %cst : f32 to vector<64x512xf32>
    %29 = arith.mulf %28, %27 : vector<64x512xf32>
    %30 = arith.maximumf %27, %29 : vector<64x512xf32>
    %c0_5 = arith.constant 0 : index
    %c0_6 = arith.constant 0 : index
    %31 = vector.load %arg4[%c0_5, %c0_6] : memref<128x64xf32, #tpu.memory_space<vmem>>, vector<128x64xf32>
    %cst_7 = arith.constant dense<0.000000e+00> : vector<128x512xf32>
    %32 = tpu.matmul %31, %30, %cst_7 {dimension_numbers = #tpu.dot_dimension_numbers<[1], [0], [0], [1], [0, 0, 1, 1], [], []>} : vector<128x64xf32>, vector<64x512xf32>, vector<128x512xf32> -> vector<128x512xf32>
    %c0_8 = arith.constant 0 : index
    %c0_9 = arith.constant 0 : index
    %33 = vector.load %arg5[%c0_8, %c0_9] : memref<128x1xf32, #tpu.memory_space<vmem>>, vector<128x1xf32>
    %34 = vector.broadcast %33 : vector<128x1xf32> to vector<128x512xf32>
    %35 = arith.addf %32, %34 : vector<128x512xf32>
    %cst_10 = arith.constant 2.000000e-01 : f32
    %36 = vector.broadcast %cst_10 : f32 to vector<128x512xf32>
    %37 = arith.mulf %36, %35 : vector<128x512xf32>
    %38 = arith.maximumf %35, %37 : vector<128x512xf32>
    %c0_11 = arith.constant 0 : index
    %c0_12 = arith.constant 0 : index
    %39 = vector.load %arg6[%c0_11, %c0_12] : memref<128x1xf32, #tpu.memory_space<vmem>>, vector<128x1xf32>
    %40 = vector.broadcast %39 : vector<128x1xf32> to vector<128x512xf32>
    %41 = arith.mulf %38, %40 : vector<128x512xf32>
    %cst_13 = arith.constant dense<0.000000e+00> : vector<512xf32>
    %42 = vector.multi_reduction <add>, %41, %cst_13 [0] : vector<128x512xf32> to vector<512xf32>
    %43 = vector.shape_cast %42 : vector<512xf32> to vector<1x512xf32>
    %c0_14 = arith.constant 0 : index
    %c0_15 = arith.constant 0 : index
    %44 = vector.load %arg7[%c0_14, %c0_15] : memref<1x512xf32, #tpu.memory_space<vmem>>, vector<1x512xf32>
    tpu.vector_store %arg7[%c0_14, %c0_15], %43 {strides = array<i32>} : memref<1x512xf32, #tpu.memory_space<vmem>>, vector<1x512xf32>,
    return
  }
  func.func @transform_0(%arg0: i32) -> (i32, i32) {
    %c0_i32 = arith.constant 0 : i32
    %c0_i32_0 = arith.constant 0 : i32
    return %c0_i32, %arg0 : i32, i32
  }
  func.func @transform_1(%arg0: i32) -> (i32, i32) {
    %c0_i32 = arith.constant 0 : i32
    %c0_i32_0 = arith.constant 0 : i32
    %c0_i32_1 = arith.constant 0 : i32
    return %c0_i32, %c0_i32_0 : i32, i32
  }
  func.func @transform_2(%arg0: i32) -> (i32, i32) {
    %c0_i32 = arith.constant 0 : i32
    %c0_i32_0 = arith.constant 0 : i32
    %c0_i32_1 = arith.constant 0 : i32
    return %c0_i32, %c0_i32_0 : i32, i32
  }
  func.func @transform_3(%arg0: i32) -> (i32, i32) {
    %c0_i32 = arith.constant 0 : i32
    %c0_i32_0 = arith.constant 0 : i32
    %c0_i32_1 = arith.constant 0 : i32
    return %c0_i32, %c0_i32_0 : i32, i32
  }
  func.func @transform_4(%arg0: i32) -> (i32, i32) {
    %c0_i32 = arith.constant 0 : i32
    %c0_i32_0 = arith.constant 0 : i32
    %c0_i32_1 = arith.constant 0 : i32
    return %c0_i32, %c0_i32_0 : i32, i32
  }
  func.func @transform_5(%arg0: i32) -> (i32, i32) {
    %c0_i32 = arith.constant 0 : i32
    %c0_i32_0 = arith.constant 0 : i32
    %c0_i32_1 = arith.constant 0 : i32
    return %c0_i32, %c0_i32_0 : i32, i32
  }
  func.func @transform_6(%arg0: i32) -> (i32, i32) {
    %c0_i32 = arith.constant 0 : i32
    %c0_i32_0 = arith.constant 0 : i32
    return %c0_i32, %arg0 : i32, i32
  }
}

</mosaic_0001>

<bundles_post_ra>
// kernel: pixel_discriminator.3
= control target key start
LH: loop header
LB: loop body
LE: loop exit
PB: predicated region body
PF: predicated region fallthrough
CT: control target
= control target key end

     0   :  { %v1643_v0 = vmov 3   ;;  %v1644_v1 = vmov 0   ;;  %v1645_v5 = vmov 1   ;;  %v1646_v6 = vmov 2   ;;  %s2426_s2 = inlined_call_operand.vmem [shape: f32[64,1], index: 2, kind: input, shape index: {}]   ;;  %s2427_s1 = inlined_call_operand.vmem [shape: f32[64,4], index: 1, kind: input, shape index: {}]   ;;  %s2428_s4 = inlined_call_operand.vmem [shape: f32[128,1], index: 4, kind: input, shape index: {}]   ;;  %s2429_s0 = inlined_call_operand.vmem [shape: f32[4,512], index: 0, kind: input, shape index: {}]   ;;  %s2430_s5 = inlined_call_operand.vmem [shape: f32[128,1], index: 5, kind: input, shape index: {}]   ;;  %s2431_s3 = inlined_call_operand.vmem [shape: f32[128,64], index: 3, kind: input, shape index: {}]   ;;  %s2432_s6 = inlined_call_operand.vmem [shape: f32[1,512], index: 6, kind: output, shape index: {}]  }
   0x1   :  { %1621 = vset.pattern.permute.xlu0 %v1643_v0  ;;  %1614 = vset.pattern.permute.xlu1 %v1644_v1  ;;  %v40_v2 = vld [vmem:[%s2426_s2 + $0x38] sm:$0xff]  ;;  %v29_v4 = vld [vmem:[%s2427_s1 + $0x20] sm:$0xff]  ;;  %v39_v7 = vld [vmem:[%s2426_s2 + $0x30] sm:$0xff]  ;;  %v2434_v22 = vmov 0.0   ;;  %v2433_v25 = vlaneseq  ;;  %vm795_vm0 = vcmask 523264  }
   0x2   :  { %v32_v3 = vld [vmem:[%s2427_s1 + $0x38] sm:$0xff]  ;;  %188 = vperm.xlu1 %1614, %v40_v2   ;;  %v31_v8 = vld [vmem:[%s2427_s1 + $0x30] sm:$0xff]  ;;  %v26_v9 = vld [vmem:[%s2427_s1 + $0x8] sm:$0xff]  ;;  %908 = vmatprep.mubr.f32.mxu0 %v2434_v22 }
   0x3   :  { %516 = vperm.xlu0 %1621, %v32_v3   ;;  %v30_v10 = vld [vmem:[%s2427_s1 + $0x28] sm:$0xff]  ;;  %v28_v11 = vld [vmem:[%s2427_s1 + $0x18] sm:$0xff]  ;;  %v37_v13 = vld [vmem:[%s2426_s2 + $0x20] sm:$0xff]  ;;  %1069 = vmatprep.mubr.f32.mxu1 %v2434_v22  ;;  %v1776_v28 = vshrl.u32 %v2433_v25, 7 }
   0x4   :  { %v38_v12 = vld [vmem:[%s2426_s2 + $0x28] sm:$0xff]  ;;  %v27_v14 = vld [vmem:[%s2427_s1 + $0x10] sm:$0xff]  ;;  %v33_v16 = vld [vmem:[%s2426_s2] sm:$0xff] }
   0x5   :  { %v35_v15 = vld [vmem:[%s2426_s2 + $0x10] sm:$0xff]  ;;  %v36_v17 = vld [vmem:[%s2426_s2 + $0x18] sm:$0xff]  ;;  %v25_v18 = vld [vmem:[%s2427_s1] sm:$0xff]  ;;  %v85_v30 = vsub.s32 0, %v1776_v28  ;;  %v89_v31 = vsub.s32 4, %v1776_v28  ;;  %v257_v35 = vsub.s32 1, %v1776_v28 }
   0x6   :  { %1615 = vset.pattern.permute.xlu1 %v1645_v5  ;;  %v34_v19 = vld [vmem:[%s2426_s2 + $0x8] sm:$0xff]  ;;  %v699_v29 = vld [vmem:[%s2428_s4] sm:$0xff]  ;;  %v701_v33 = vld [vmem:[%s2428_s4 + $0x10] sm:$0xff]  ;;  %v261_v36 = vsub.s32 5, %v1776_v28  ;;  %v389_v45 = vsub.s32 2, %v1776_v28  ;;  %v393_v46 = vsub.s32 6, %v1776_v28 }
   0x7   :  { %1627 = vset.pattern.permute.xlu0 %v1646_v6  ;;  %252 = vperm.xlu1 %1615, %v32_v3   ;;  %v1795_v37 = vld [vmem:[%s2429_s0] sm:$0xff]  ;;  %v1800_v38 = vld [vmem:[%s2429_s0 + $0x8] sm:$0xff]  ;;  %v702_v44 = vld [vmem:[%s2428_s4 + $0x18] sm:$0xff]  ;;  %v521_v56 = vsub.s32 3, %v1776_v28  ;;  %v525_v57 = vsub.s32 7, %v1776_v28 }
   0x8   :  { %372 = vperm.xlu0 %1627, %v29_v4   ;;  %v86_v39 = vrot.slane %v1795_v37, %v85_v30  ;;  %v90_v40 = vrot.slane %v1795_v37, %v89_v31  ;;  %v94_v42 = vrot.slane %v1800_v38, %v85_v30  ;;  %v98_v43 = vrot.slane %v1800_v38, %v89_v31  ;;  %v700_v58 = vld [vmem:[%s2428_s4 + $0x8] sm:$0xff] }
   0x9   :  { %v258_v47 = vrot.slane %v1795_v37, %v257_v35  ;;  %v262_v48 = vrot.slane %v1795_v37, %v261_v36  ;;  %v266_v50 = vrot.slane %v1800_v38, %v257_v35  ;;  %v270_v51 = vrot.slane %v1800_v38, %v261_v36 }
   0xa   :  { %v1819_v52 = vrot.slane %v86_v39, %v85_v30  ;;  %v1821_v53 = vrot.slane %v90_v40, %v85_v30  ;;  %v1823_v54 = vrot.slane %v94_v42, %v85_v30  ;;  %v1825_v55 = vrot.slane %v98_v43, %v85_v30 }
   0xb   :  { %1616 = vset.pattern.permute.xlu1 %v1644_v1  ;;  %v390_v59 = vrot.slane %v1795_v37, %v389_v45  ;;  %v394_v60 = vrot.slane %v1795_v37, %v393_v46  ;;  %v398_v61 = vrot.slane %v1800_v38, %v389_v45  ;;  %v402_v62 = vrot.slane %v1800_v38, %v393_v46  ;;  %v1295_v46 = vld [vmem:[%s2430_s5 + $0x8] sm:$0xff] }
   0xc   :  { %1628 = vset.pattern.permute.xlu0 %v1645_v5  ;;  %183 = vperm.xlu1 %1616, %v39_v7   ;;  %v1847_v7 = vrot.slane %v266_v50, %v257_v35 }
   0xd   :  { %248 = vperm.xlu0 %1628, %v31_v8   ;;  %v1867_v30 = vrot.slane %v390_v59, %v389_v45  ;;  %v1869_v31 = vrot.slane %v394_v60, %v389_v45 }
  0x10   :  { %1617 = vset.pattern.permute.xlu1 %v1646_v6 }
  0x11   :  { %240 = vperm.xlu0 %1628, %v29_v4   ;;  %384 = vperm.xlu1 %1617, %v32_v3  }
  0x15   :  { %228 = vperm.xlu0 %1628, %v26_v9   ;;  %1618 = vset.pattern.permute.xlu1 %v1644_v1 }
  0x16   :  { %63 = vperm.xlu1 %1618, %v29_v4  }
  0x19   :  { %1634 = vset.pattern.permute.xlu0 %v1644_v1 }
  0x1a   :  { %78 = vperm.xlu0 %1634, %v32_v3   ;;  %1619 = vset.pattern.permute.xlu1 %v1645_v5 }
  0x1b   :  { %244 = vperm.xlu1 %1619, %v30_v10  }
  0x1e   :  { %73 = vperm.xlu0 %1634, %v31_v8  }
  0x1f   :  { %1620 = vset.pattern.permute.xlu1 %v1646_v6 }
  0x20   :  { %380 = vperm.xlu1 %1620, %v31_v8  }
  0x22   :  { %68 = vperm.xlu0 %1634, %v30_v10  }
  0x24   :  { %1622 = vset.pattern.permute.xlu1 %v1644_v1 }
  0x25   :  { %58 = vperm.xlu1 %1622, %v28_v11  }
  0x26   :  { %178 = vperm.xlu0 %1634, %v38_v12   ;;  %v522_v12 = vrot.slane %v1795_v37, %v521_v56 }
  0x28   :  { %v1889_v43 = vrot.slane %v522_v12, %v521_v56 }
  0x29   :  { %173 = vperm.xlu1 %1622, %v37_v13   ;;  %v530_v13 = vrot.slane %v1800_v38, %v521_v56 }
  0x2a   :  { %53 = vperm.xlu0 %1634, %v27_v14  }
  0x2d   :  { %1623 = vset.pattern.permute.xlu1 %v1646_v6 }
  0x2e   :  { %163 = vperm.xlu0 %1634, %v35_v15   ;;  %376 = vperm.xlu1 %1623, %v30_v10   ;;  %v703_v15 = vld [vmem:[%s2428_s4 + $0x20] sm:$0xff] }
  0x32   :  { %153 = vperm.xlu0 %1634, %v33_v16   ;;  %1624 = vset.pattern.permute.xlu1 %v1643_v0 }
  0x33   :  { %512 = vperm.xlu1 %1624, %v31_v8   ;;  %v1849_v8 = vrot.slane %v270_v51, %v257_v35 }
  0x36   :  { %1637 = vset.pattern.permute.xlu0 %v1643_v0 }
  0x37   :  { %504 = vperm.xlu0 %1637, %v29_v4   ;;  %1625 = vset.pattern.permute.xlu1 %v1644_v1 }
  0x38   :  { %168 = vperm.xlu1 %1625, %v36_v17  }
  0x3b   :  { %496 = vperm.xlu0 %1637, %v27_v14  }
  0x3c   :  { %1626 = vset.pattern.permute.xlu1 %v1645_v5 }
  0x3d   :  { %236 = vperm.xlu1 %1626, %v28_v11  }
  0x3f   :  { %488 = vperm.xlu0 %1637, %v25_v18  }
  0x41   :  { %1629 = vset.pattern.permute.xlu1 %v1643_v0 }
  0x42   :  { %508 = vperm.xlu1 %1629, %v30_v10   ;;  %v526_v10 = vrot.slane %v1795_v37, %v525_v57 }
  0x43   :  { %1642 = vset.pattern.permute.xlu0 %v1644_v1 }
  0x44   :  { %722 = vperm.xlu0 %1642, %v700_v58   ;;  %v1885_v40 = vrot.slane %v526_v10, %v521_v56 }
  0x46   :  { %1630 = vset.pattern.permute.xlu1 %v1644_v1 }
  0x47   :  { %48 = vperm.xlu1 %1630, %v26_v9  }
  0x48   :  { %737 = vperm.xlu0 %1642, %v703_v15  }
  0x4b   :  { %1631 = vset.pattern.permute.xlu1 %v1645_v5 }
  0x4c   :  { %232 = vperm.xlu1 %1631, %v27_v14   ;;  %1317 = vperm.xlu0 %1642, %v1295_v46  }
  0x50   :  { %1632 = vset.pattern.permute.xlu1 %v1646_v6 }
  0x51   :  { %368 = vperm.xlu1 %1632, %v28_v11  }
  0x55   :  { %1633 = vset.pattern.permute.xlu1 %v1644_v1 }
  0x56   :  { %43 = vperm.xlu1 %1633, %v25_v18  }
  0x5a   :  { %158 = vperm.xlu1 %1633, %v34_v19  }
  0x5e   :  { %1635 = vset.pattern.permute.xlu1 %v1646_v6 }
  0x5f   :  { %364 = vperm.xlu1 %1635, %v27_v14   ;;  %v704_v14 = vld [vmem:[%s2428_s4 + $0x28] sm:$0xff] }
  0x63   :  { %1636 = vset.pattern.permute.xlu1 %v1643_v0 }
  0x64   :  { %500 = vperm.xlu1 %1636, %v28_v11   ;;  %v534_v11 = vrot.slane %v1800_v38, %v525_v57 }
  0x66   :  { %v1887_v42 = vrot.slane %v534_v11, %v521_v56 }
  0x68   :  { %1638 = vset.pattern.permute.xlu1 %v1645_v5  ;;  %v1843_v5 = vrot.slane %v258_v47, %v257_v35 }
  0x69   :  { %224 = vperm.xlu1 %1638, %v25_v18  }
  0x6d   :  { %1639 = vset.pattern.permute.xlu1 %v1646_v6  ;;  %v1845_v6 = vrot.slane %v262_v48, %v257_v35  ;;  %v1873_v35 = vrot.slane %v402_v62, %v389_v45 }
  0x6e   :  { %360 = vperm.xlu1 %1639, %v26_v9  }
  0x72   :  { %356 = vperm.xlu1 %1639, %v25_v18  }
  0x76   :  { %1640 = vset.pattern.permute.xlu1 %v1643_v0  ;;  %v1294_v0 = vld [vmem:[%s2430_s5] sm:$0xff] }
  0x77   :  { %492 = vperm.xlu1 %1640, %v26_v9  }
  0x7b   :  { %1641 = vset.pattern.permute.xlu1 %v1644_v1 }
  0x7c   :  { %717 = vperm.xlu1 %1641, %v699_v29  }
  0x7d   :  { %v1761_v20 = vpop.permute.xlu1 %188 }
  0x7e   :  { %v1763_v21 = vpop.permute.xlu0 %516 }
  0x7f   :  { %v584_v60 = vmul.f32 %v1885_v40, %v1763_v21  ;;  %v583_v62 = vmul.f32 %v1889_v43, %v1763_v21 }
  0x80   :  { %727 = vperm.xlu1 %1641, %v701_v33   ;;  %v1871_v33 = vrot.slane %v398_v61, %v389_v45  ;;  %v705_v45 = vld [vmem:[%s2428_s4 + $0x30] sm:$0xff]  ;;  %v586_v61 = vmul.f32 %v1887_v42, %v1763_v21 }
  0x82   :  { %v1767_v23 = vpop.permute.xlu1 %252 }
  0x83   :  { %v1769_v24 = vpop.permute.xlu0 %372  ;;  %v319_v36 = vmul.f32 %v1843_v5, %v1767_v23  ;;  %v320_v37 = vmul.f32 %v1845_v6, %v1767_v23  ;;  %v322_v38 = vmul.f32 %v1849_v8, %v1767_v23 }
  0x84   :  { %732 = vperm.xlu1 %1641, %v702_v44   ;;  %v1891_v44 = vrot.slane %v530_v13, %v521_v56 }
  0x87   :  { %v1771_v26 = vpop.permute.xlu1 %183 }
  0x88   :  { %v1773_v27 = vpop.permute.xlu0 %248  ;;  %1312 = vperm.xlu1 %1641, %v1294_v0   ;;  %v706_v0 = vld [vmem:[%s2428_s4 + $0x38] sm:$0xff] }
  0x8c   :  { %v1783_v32 = vpop.permute.xlu0 %240  ;;  %v1788_v34 = vpop.permute.xlu1 %384  ;;  %742 = vperm.xlu1 %1641, %v704_v14  }
  0x8d   :  { %v451_v56 = vmul.f32 %v1867_v30, %v1788_v34  ;;  %v452_v57 = vmul.f32 %v1869_v31, %v1788_v34  ;;  %v453_v58 = vmul.f32 %v1871_v33, %v1788_v34  ;;  %v454_v59 = vmul.f32 %v1873_v35, %v1788_v34  ;;  %v1296_v34 = vld [vmem:[%s2430_s5 + $0x10] sm:$0xff] }
  0x8e   :  { %1322 = vperm.xlu0 %1642, %v1296_v34  }
  0x90   :  { %v1804_v41 = vpop.permute.xlu0 %228  ;;  %747 = vperm.xlu1 %1641, %v705_v45  }
  0x91   :  { %v1815_v49 = vpop.permute.xlu1 %63 }
  0x94   :  { %752 = vperm.xlu1 %1641, %v706_v0  }
  0x95   :  { %v79_v63 = vpop.permute.xlu0 %78 }
  0x96   :  { %v147_v1 = vmul.f32 %v1819_v52, %v79_v63  ;;  %v148_v2 = vmul.f32 %v1821_v53, %v79_v63  ;;  %v149_v3 = vmul.f32 %v1823_v54, %v79_v63  ;;  %v150_v4 = vmul.f32 %v1825_v55, %v79_v63  ;;  %v1851_v9 = vpop.permute.xlu1 %244 }
  0x97   :  { %v585_v63 = vmul.f32 %v1891_v44, %v1763_v21 }
  0x98   :  { %v219_v16 = vadd.f32 %v1761_v20, %v147_v1  ;;  %v220_v17 = vadd.f32 %v1761_v20, %v148_v2  ;;  %v221_v18 = vadd.f32 %v1761_v20, %v149_v3  ;;  %v222_v19 = vadd.f32 %v1761_v20, %v150_v4 }
  0x99   :  { %v74_v29 = vpop.permute.xlu0 %73  ;;  %v321_v20 = vmul.f32 %v1847_v7, %v1767_v23 }
  0x9a   :  { %v352_v23 = vadd.f32 %v320_v37, %v220_v17  ;;  %v354_v48 = vadd.f32 %v322_v38, %v222_v19  ;;  %v351_v50 = vadd.f32 %v319_v36, %v219_v16  ;;  %v143_v12 = vmul.f32 %v1819_v52, %v74_v29  ;;  %v707_v19 = vld [vmem:[%s2428_s4 + $0x40] sm:$0xff]  ;;  %v1297_v36 = vld [vmem:[%s2430_s5 + $0x18] sm:$0xff] }
  0x9b   :  { %v1883_v39 = vpop.permute.xlu1 %380  ;;  %v353_v51 = vadd.f32 %v321_v20, %v221_v18  ;;  %v144_v21 = vmul.f32 %v1821_v53, %v74_v29  ;;  %v145_v13 = vmul.f32 %v1823_v54, %v74_v29  ;;  %v146_v14 = vmul.f32 %v1825_v55, %v74_v29  ;;  %1327 = vperm.xlu0 %1642, %v1297_v36   ;;  %v709_v36 = vld [vmem:[%s2428_s4 + $0x50] sm:$0xff] }
  0x9c   :  { %v484_v3 = vadd.f32 %v452_v57, %v352_v23  ;;  %v486_v4 = vadd.f32 %v454_v59, %v354_v48  ;;  %v483_v10 = vadd.f32 %v451_v56, %v351_v50  ;;  %v315_v37 = vmul.f32 %v1843_v5, %v1773_v27  ;;  %757 = vperm.xlu1 %1641, %v707_v19  }
  0x9d   :  { %v1899_v47 = vpop.permute.xlu0 %68  ;;  %v485_v11 = vadd.f32 %v453_v58, %v353_v51  ;;  %v316_v20 = vmul.f32 %v1845_v6, %v1773_v27  ;;  %v317_v29 = vmul.f32 %v1847_v7, %v1773_v27  ;;  %v318_v38 = vmul.f32 %v1849_v8, %v1773_v27 }
  0x9e   :  { %v616_v15 = vadd.f32 %v584_v60, %v484_v3  ;;  %v618_v16 = vadd.f32 %v586_v61, %v486_v4  ;;  %v615_v17 = vadd.f32 %v583_v62, %v483_v10  ;;  %v215_v46 = vadd.f32 %v1771_v26, %v143_v12  ;;  %v1298_v61 = vld [vmem:[%s2430_s5 + $0x20] sm:$0xff] }
  0x9f   :  { %v617_v18 = vadd.f32 %v585_v63, %v485_v11  ;;  %v216_v23 = vadd.f32 %v1771_v26, %v144_v21  ;;  %v217_v51 = vadd.f32 %v1771_v26, %v145_v13  ;;  %v218_v56 = vadd.f32 %v1771_v26, %v146_v14  ;;  %v708_v26 = vld [vmem:[%s2428_s4 + $0x48] sm:$0xff]  ;;  %1332 = vperm.xlu0 %1642, %v1298_v61  }
  0xa0   :  { %v1923_v1 = vpop.permute.xlu1 %58  ;;  %v648_v48 = vmul.f32 0.2, %v616_v15  ;;  %v650_v50 = vmul.f32 0.2, %v618_v16  ;;  %v647_v57 = vmul.f32 0.2, %v615_v17  ;;  %v447_v62 = vmul.f32 %v1867_v30, %v1883_v39  ;;  %762 = vperm.xlu1 %1641, %v708_v26  }
  0xa1   :  { %v1925_v2 = vpop.permute.xlu0 %178  ;;  %v649_v58 = vmul.f32 0.2, %v617_v18  ;;  %v448_v63 = vmul.f32 %v1869_v31, %v1883_v39  ;;  %v347_v3 = vadd.f32 %v315_v37, %v215_v46  ;;  %v449_v4 = vmul.f32 %v1871_v33, %v1883_v39 }
  0xa2   :  { %v680_v60 = vmax.f32 %v616_v15, %v648_v48  ;;  %v682_v27 = vmax.f32 %v618_v16, %v650_v50  ;;  %v679_v0 = vmax.f32 %v615_v17, %v647_v57  ;;  %v450_v10 = vmul.f32 %v1873_v35, %v1883_v39  ;;  %v1299_v15 = vld [vmem:[%s2430_s5 + $0x28] sm:$0xff] }
  0xa3   :  { %v681_v34 = vmax.f32 %v617_v18, %v649_v58  ;;  %v348_v12 = vadd.f32 %v316_v20, %v216_v23  ;;  %v349_v21 = vadd.f32 %v317_v29, %v217_v51  ;;  %v350_v13 = vadd.f32 %v318_v38, %v218_v56  ;;  %1337 = vperm.xlu0 %1642, %v1299_v15  }
  0xa4   :  { %v1945_v45 = vpop.permute.xlu1 %173  ;;  %860 = vmatprep.subr.mxu0 %v680_v60  ;;  %1021 = vmatprep.subr.mxu1 %v682_v27  ;;  %v1971_v14 = vmul.f32 %v1867_v30, %v1769_v24  ;;  %v1978_v39 = vmul.f32 %v1869_v31, %v1769_v24  ;;  %v1982_v16 = vmul.f32 %v1871_v33, %v1769_v24  ;;  %v1300_v60 = vld [vmem:[%s2430_s5 + $0x30] sm:$0xff] }
  0xa5   :  { %v1951_v59 = vpop.permute.xlu0 %53  ;;  %861 = vmatpush1.msra.mxu0 %v679_v0  ;;  %1022 = vmatpush1.msra.mxu1 %v681_v34  ;;  %v1986_v17 = vmul.f32 %v1843_v5, %v1783_v32  ;;  %v1990_v18 = vmul.f32 %v1845_v6, %v1783_v32  ;;  %v1999_v37 = vmul.f32 %v1847_v7, %v1783_v32  ;;  %v710_v0 = vld [vmem:[%s2428_s4 + $0x58] sm:$0xff] }
  0xa6   :  { %v2003_v20 = vmul.f32 %v1849_v8, %v1783_v32  ;;  %v135_v29 = vmul.f32 %v1819_v52, %v1815_v49  ;;  %v136_v38 = vmul.f32 %v1821_v53, %v1815_v49  ;;  %v479_v46 = vadd.f32 %v447_v62, %v347_v3  ;;  %767 = vperm.xlu1 %1641, %v709_v36  }
  0xa7   :  { %v480_v23 = vadd.f32 %v448_v63, %v348_v12  ;;  %v481_v48 = vadd.f32 %v449_v4, %v349_v21  ;;  %v482_v50 = vadd.f32 %v450_v10, %v350_v13  ;;  %v137_v27 = vmul.f32 %v1823_v54, %v1815_v49  ;;  %1342 = vperm.xlu0 %1642, %v1300_v60  }
  0xa8   :  { %v138_v61 = vmul.f32 %v1825_v55, %v1815_v49  ;;  %v311_v62 = vmul.f32 %v1843_v5, %v1851_v9  ;;  %v312_v63 = vmul.f32 %v1845_v6, %v1851_v9  ;;  %v139_v10 = vmul.f32 %v1819_v52, %v1899_v47 }
  0xa9   :  { %v1967_v11 = vpop.permute.xlu1 %376  ;;  %v1992_v19 = vpop.permute.xlu0 %163  ;;  %v140_v49 = vmul.f32 %v1821_v53, %v1899_v47  ;;  %v141_v12 = vmul.f32 %v1823_v54, %v1899_v47  ;;  %v142_v21 = vmul.f32 %v1825_v55, %v1899_v47  ;;  %v313_v15 = vmul.f32 %v1847_v7, %v1851_v9 }
  0xaa   :  { %772 = vperm.xlu1 %1641, %v710_v0   ;;  %v210_v47 = vadd.f32 %v1945_v45, %v138_v61  ;;  %v711_v0 = vld [vmem:[%s2428_s4 + $0x60] sm:$0xff]  ;;  %v209_v22 = vadd.f32 %v1945_v45, %v137_v27 }
  0xab   :  { %v214_v61 = vadd.f32 %v1925_v2, %v142_v21 }
  0xac   :  { %v342_v21 = vadd.f32 %v2003_v20, %v210_v47  ;;  %v1303_v20 = vld [vmem:[%s2430_s5 + $0x48] sm:$0xff] }
  0xad   :  { %v2035_v13 = vpop.permute.xlu0 %153 }
  0xae   :  { %v513_v51 = vpop.permute.xlu1 %512  ;;  %777 = vperm.xlu1 %1641, %v711_v0  }
  0xaf   :  { %v579_v56 = vmul.f32 %v1889_v43, %v513_v51  ;;  %v580_v57 = vmul.f32 %v1885_v40, %v513_v51  ;;  %v581_v58 = vmul.f32 %v1891_v44, %v513_v51  ;;  %v582_v32 = vmul.f32 %v1887_v42, %v513_v51 }
  0xb0   :  { %v207_v51 = vadd.f32 %v1945_v45, %v135_v29  ;;  %v212_v29 = vadd.f32 %v1925_v2, %v140_v49  ;;  %v445_v49 = vmul.f32 %v1871_v33, %v1967_v11 }
  0xb1   :  { %v612_v34 = vadd.f32 %v580_v57, %v480_v23  ;;  %v614_v26 = vadd.f32 %v582_v32, %v482_v50  ;;  %v611_v3 = vadd.f32 %v579_v56, %v479_v46  ;;  %v613_v4 = vadd.f32 %v581_v58, %v481_v48  ;;  %v1301_v57 = vld [vmem:[%s2430_s5 + $0x38] sm:$0xff] }
  0xb2   :  { %v314_v50 = vmul.f32 %v1849_v8, %v1851_v9  ;;  %v208_v56 = vadd.f32 %v1945_v45, %v136_v38  ;;  %1347 = vperm.xlu0 %1642, %v1301_v57   ;;  %v211_v9 = vadd.f32 %v1925_v2, %v139_v10  ;;  %v213_v38 = vadd.f32 %v1925_v2, %v141_v12  ;;  %v505_v45 = vpop.permute.xlu0 %504 }
  0xb3   :  { %v2039_v36 = vpop.permute.xlu1 %168  ;;  %v644_v46 = vmul.f32 0.2, %v612_v34  ;;  %v646_v23 = vmul.f32 0.2, %v614_v26  ;;  %v643_v48 = vmul.f32 0.2, %v611_v3  ;;  %v444_v10 = vmul.f32 %v1869_v31, %v1967_v11 }
  0xb4   :  { %v645_v25 = vmul.f32 0.2, %v613_v4  ;;  %v446_v2 = vmul.f32 %v1873_v35, %v1967_v11  ;;  %v340_v12 = vadd.f32 %v1990_v18, %v208_v56  ;;  %v346_v57 = vadd.f32 %v314_v50, %v214_v61 }
  0xb5   :  { %v676_v58 = vmax.f32 %v612_v34, %v644_v46  ;;  %v678_v32 = vmax.f32 %v614_v26, %v646_v23  ;;  %v675_v60 = vmax.f32 %v611_v3, %v643_v48  ;;  %v443_v34 = vmul.f32 %v1867_v30, %v1967_v11  ;;  %v1302_v3 = vld [vmem:[%s2430_s5 + $0x40] sm:$0xff]  ;;  %v712_v46 = vld [vmem:[%s2428_s4 + $0x68] sm:$0xff] }
  0xb6   :  { %v677_v26 = vmax.f32 %v613_v4, %v645_v25  ;;  %v442_v25 = vmul.f32 %v1873_v35, %v1769_v24  ;;  %v339_v4 = vadd.f32 %v1986_v17, %v207_v51  ;;  %v343_v11 = vadd.f32 %v311_v62, %v211_v9  ;;  %1352 = vperm.xlu0 %1642, %v1302_v3  }
  0xb7   :  { %862 = vmatprep.subr.mxu0 %v676_v58  ;;  %1023 = vmatprep.subr.mxu1 %v678_v32  ;;  %v344_v23 = vadd.f32 %v312_v63, %v212_v29  ;;  %v345_v48 = vadd.f32 %v313_v15, %v213_v38  ;;  %v341_v58 = vadd.f32 %v1999_v37, %v209_v22  ;;  %v713_v32 = vld [vmem:[%s2428_s4 + $0x70] sm:$0xff] }
  0xb8   :  { %v2068_v27 = vpop.permute.xlu1 %236  ;;  %863 = vmatpush1.msra.mxu0 %v675_v60  ;;  %1024 = vmatpush1.msra.mxu1 %v677_v26  ;;  %v571_v24 = vmul.f32 %v1889_v43, %v505_v45  ;;  %v572_v17 = vmul.f32 %v1885_v40, %v505_v45  ;;  %v574_v18 = vmul.f32 %v1887_v42, %v505_v45 }
  0xb9   :  { %v475_v51 = vadd.f32 %v443_v34, %v343_v11  ;;  %v476_v56 = vadd.f32 %v444_v10, %v344_v23  ;;  %v477_v47 = vadd.f32 %v445_v49, %v345_v48  ;;  %v478_v62 = vadd.f32 %v446_v2, %v346_v57  ;;  %782 = vperm.xlu1 %1641, %v712_v46  }
  0xba   :  { %v573_v63 = vmul.f32 %v1891_v44, %v505_v45  ;;  %v472_v22 = vadd.f32 %v1978_v39, %v340_v12  ;;  %v474_v37 = vadd.f32 %v442_v25, %v342_v21  ;;  %v471_v50 = vadd.f32 %v1971_v14, %v339_v4  ;;  %1357 = vperm.xlu0 %1642, %v1303_v20   ;;  %v1304_v14 = vld [vmem:[%s2430_s5 + $0x50] sm:$0xff]  ;;  %v714_v45 = vld [vmem:[%s2428_s4 + $0x78] sm:$0xff] }
  0xbb   :  { %v473_v39 = vadd.f32 %v1982_v16, %v341_v58 }
  0xbc   :  { %v604_v38 = vadd.f32 %v572_v17, %v472_v22  ;;  %v606_v61 = vadd.f32 %v574_v18, %v474_v37  ;;  %v603_v34 = vadd.f32 %v571_v24, %v471_v50  ;;  %v1305_v24 = vld [vmem:[%s2430_s5 + $0x58] sm:$0xff]  ;;  %v127_v50 = vmul.f32 %v1819_v52, %v1951_v59 }
  0xbd   :  { %v509_v15 = vpop.permute.xlu1 %508  ;;  %787 = vperm.xlu1 %1641, %v713_v32   ;;  %v605_v2 = vadd.f32 %v573_v63, %v473_v39  ;;  %v1309_v37 = vld [vmem:[%s2430_s5 + $0x78] sm:$0xff]  ;;  %v128_v32 = vmul.f32 %v1821_v53, %v1951_v59  ;;  %v131_v39 = vmul.f32 %v1819_v52, %v1923_v1 }
  0xbe   :  { %v575_v60 = vmul.f32 %v1889_v43, %v509_v15  ;;  %v576_v0 = vmul.f32 %v1885_v40, %v509_v15  ;;  %v577_v9 = vmul.f32 %v1891_v44, %v509_v15  ;;  %v578_v29 = vmul.f32 %v1887_v42, %v509_v15  ;;  %1362 = vperm.xlu0 %1642, %v1304_v14   ;;  %v1306_v15 = vld [vmem:[%s2430_s5 + $0x60] sm:$0xff] }
  0xbf   :  { %v636_v16 = vmul.f32 0.2, %v604_v38  ;;  %v638_v46 = vmul.f32 0.2, %v606_v61  ;;  %v635_v11 = vmul.f32 0.2, %v603_v34  ;;  %v132_v14 = vmul.f32 %v1821_v53, %v1923_v1 }
  0xc0   :  { %v608_v26 = vadd.f32 %v576_v0, %v476_v56  ;;  %v610_v3 = vadd.f32 %v578_v29, %v478_v62  ;;  %v607_v10 = vadd.f32 %v575_v60, %v475_v51  ;;  %v609_v49 = vadd.f32 %v577_v9, %v477_v47  ;;  %v1307_v62 = vld [vmem:[%s2430_s5 + $0x68] sm:$0xff]  ;;  %v1308_v60 = vld [vmem:[%s2430_s5 + $0x70] sm:$0xff] }
  0xc1   :  { %792 = vperm.xlu1 %1641, %v714_v45   ;;  %v637_v17 = vmul.f32 0.2, %v605_v2  ;;  %v668_v51 = vmax.f32 %v604_v38, %v636_v16  ;;  %v670_v56 = vmax.f32 %v606_v61, %v638_v46  ;;  %v667_v47 = vmax.f32 %v603_v34, %v635_v11 }
  0xc2   :  { %v2102_v25 = vpop.permute.xlu1 %48  ;;  %v640_v4 = vmul.f32 0.2, %v608_v26  ;;  %v642_v12 = vmul.f32 0.2, %v610_v3  ;;  %v639_v21 = vmul.f32 0.2, %v607_v10  ;;  %1367 = vperm.xlu0 %1642, %v1305_v24   ;;  %v129_v0 = vmul.f32 %v1823_v54, %v1951_v59 }
  0xc3   :  { %v641_v58 = vmul.f32 0.2, %v609_v49  ;;  %v669_v63 = vmax.f32 %v605_v2, %v637_v17  ;;  %v130_v9 = vmul.f32 %v1825_v55, %v1951_v59  ;;  %v295_v29 = vmul.f32 %v1843_v5, %v1804_v41  ;;  %v497_v59 = vpop.permute.xlu0 %496 }
  0xc4   :  { %v672_v23 = vmax.f32 %v608_v26, %v640_v4  ;;  %v674_v48 = vmax.f32 %v610_v3, %v642_v12  ;;  %v671_v57 = vmax.f32 %v607_v10, %v639_v21  ;;  %v296_v38 = vmul.f32 %v1845_v6, %v1804_v41 }
  0xc5   :  { %v673_v18 = vmax.f32 %v609_v49, %v641_v58  ;;  %1377 = vperm.xlu1 %1641, %v1307_v62   ;;  %v297_v61 = vmul.f32 %v1847_v7, %v1804_v41  ;;  %v298_v34 = vmul.f32 %v1849_v8, %v1804_v41  ;;  %v133_v26 = vmul.f32 %v1823_v54, %v1923_v1 }
  0xc6   :  { %864 = vmatprep.subr.mxu0 %v672_v23  ;;  %1025 = vmatprep.subr.mxu1 %v674_v48  ;;  %v134_v3 = vmul.f32 %v1825_v55, %v1923_v1  ;;  %v199_v10 = vadd.f32 %v1992_v19, %v127_v50  ;;  %v200_v49 = vadd.f32 %v1992_v19, %v128_v32 }
  0xc7   :  { %v2107_v20 = vpop.permute.xlu1 %232  ;;  %865 = vmatpush1.msra.mxu0 %v671_v57  ;;  %1026 = vmatpush1.msra.mxu1 %v673_v18  ;;  %v201_v41 = vadd.f32 %v1992_v19, %v129_v0  ;;  %v202_v45 = vadd.f32 %v1992_v19, %v130_v9  ;;  %v203_v4 = vadd.f32 %v2039_v36, %v131_v39 }
  0xc8   :  { %866 = vmatprep.subr.mxu0 %v668_v51  ;;  %1027 = vmatprep.subr.mxu1 %v670_v56  ;;  %v204_v12 = vadd.f32 %v2039_v36, %v132_v14  ;;  %v205_v21 = vadd.f32 %v2039_v36, %v133_v26  ;;  %v206_v16 = vadd.f32 %v2039_v36, %v134_v3 }
  0xc9   :  { %867 = vmatpush1.msra.mxu0 %v667_v47  ;;  %1028 = vmatpush1.msra.mxu1 %v669_v63  ;;  %v303_v1 = vmul.f32 %v1843_v5, %v2068_v27  ;;  %v563_v46 = vmul.f32 %v1889_v43, %v497_v59  ;;  %v123_v11 = vmul.f32 %v1819_v52, %v2102_v25 }
  0xca   :  { %1372 = vperm.xlu0 %1642, %v1306_v15   ;;  %1387 = vperm.xlu1 %1641, %v1309_v37   ;;  %v124_v23 = vmul.f32 %v1821_v53, %v2102_v25  ;;  %v125_v19 = vmul.f32 %v1823_v54, %v2102_v25  ;;  %v126_v48 = vmul.f32 %v1825_v55, %v2102_v25 }
  0xcb   :  { %v299_v36 = vmul.f32 %v1843_v5, %v2107_v20  ;;  %v300_v57 = vmul.f32 %v1845_v6, %v2107_v20  ;;  %v302_v58 = vmul.f32 %v1849_v8, %v2107_v20  ;;  %v564_v17 = vmul.f32 %v1885_v40, %v497_v59 }
  0xcc   :  { %v369_v22 = vpop.permute.xlu1 %368  ;;  %v304_v62 = vmul.f32 %v1845_v6, %v2068_v27  ;;  %v305_v25 = vmul.f32 %v1847_v7, %v2068_v27  ;;  %v306_v63 = vmul.f32 %v1849_v8, %v2068_v27  ;;  %v335_v15 = vadd.f32 %v303_v1, %v203_v4 }
  0xcd   :  { %v301_v0 = vmul.f32 %v1847_v7, %v2107_v20  ;;  %v331_v9 = vadd.f32 %v299_v36, %v199_v10  ;;  %v332_v39 = vadd.f32 %v300_v57, %v200_v49  ;;  %v334_v14 = vadd.f32 %v302_v58, %v202_v45 }
  0xce   :  { %1382 = vperm.xlu0 %1642, %v1308_v60   ;;  %v435_v26 = vmul.f32 %v1867_v30, %v369_v22  ;;  %v436_v3 = vmul.f32 %v1869_v31, %v369_v22  ;;  %v437_v27 = vmul.f32 %v1871_v33, %v369_v22  ;;  %v336_v10 = vadd.f32 %v304_v62, %v204_v12 }
  0xcf   :  { %v337_v49 = vadd.f32 %v305_v25, %v205_v21  ;;  %v338_v45 = vadd.f32 %v306_v63, %v206_v16  ;;  %v566_v1 = vmul.f32 %v1887_v42, %v497_v59 }
  0xd0   :  { %v467_v36 = vadd.f32 %v435_v26, %v335_v15  ;;  %v468_v57 = vadd.f32 %v436_v3, %v336_v10 }
  0xd1   :  { %v2147_v2 = vpop.permute.xlu1 %43  ;;  %v469_v58 = vadd.f32 %v437_v27, %v337_v49 }
  0xd5   :  { %v159_v24 = vpop.permute.xlu1 %158 }
  0xd6   :  { %v195_v18 = vadd.f32 %v159_v24, %v123_v11  ;;  %v196_v51 = vadd.f32 %v159_v24, %v124_v23  ;;  %v197_v56 = vadd.f32 %v159_v24, %v125_v19  ;;  %v198_v47 = vadd.f32 %v159_v24, %v126_v48 }
  0xd7   :  { %v333_v11 = vadd.f32 %v301_v0, %v201_v41  ;;  %v119_v0 = vmul.f32 %v1819_v52, %v2147_v2 }
  0xd8   :  { %v2179_v37 = vadd.f32 %v295_v29, %v195_v18  ;;  %v2181_v50 = vadd.f32 %v296_v38, %v196_v51  ;;  %v2183_v32 = vadd.f32 %v297_v61, %v197_v56  ;;  %v2185_v60 = vadd.f32 %v298_v34, %v198_v47 }
  0xd9   :  { %v438_v29 = vmul.f32 %v1873_v35, %v369_v22  ;;  %v565_v22 = vmul.f32 %v1891_v44, %v497_v59 }
  0xda   :  { %v365_v38 = vpop.permute.xlu1 %364 }
  0xdb   :  { %v431_v61 = vmul.f32 %v1867_v30, %v365_v38  ;;  %v432_v34 = vmul.f32 %v1869_v31, %v365_v38  ;;  %v433_v4 = vmul.f32 %v1871_v33, %v365_v38  ;;  %v434_v20 = vmul.f32 %v1873_v35, %v365_v38 }
  0xdc   :  { %v470_v24 = vadd.f32 %v438_v29, %v338_v45 }
  0xdd   :  { %v463_v23 = vadd.f32 %v431_v61, %v331_v9  ;;  %v464_v19 = vadd.f32 %v432_v34, %v332_v39  ;;  %v466_v48 = vadd.f32 %v434_v20, %v334_v14  ;;  %v465_v18 = vadd.f32 %v433_v4, %v333_v11 }
  0xde   :  { %v120_v9 = vmul.f32 %v1821_v53, %v2147_v2  ;;  %v121_v14 = vmul.f32 %v1823_v54, %v2147_v2 }
  0xdf   :  { %v501_v51 = vpop.permute.xlu1 %500  ;;  %v596_v41 = vadd.f32 %v564_v17, %v464_v19  ;;  %v598_v47 = vadd.f32 %v566_v1, %v466_v48  ;;  %v595_v62 = vadd.f32 %v563_v46, %v463_v23  ;;  %v597_v39 = vadd.f32 %v565_v22, %v465_v18 }
  0xe0   :  { %v567_v56 = vmul.f32 %v1889_v43, %v501_v51  ;;  %v568_v12 = vmul.f32 %v1885_v40, %v501_v51  ;;  %v569_v21 = vmul.f32 %v1891_v44, %v501_v51  ;;  %v570_v16 = vmul.f32 %v1887_v42, %v501_v51 }
  0xe1   :  { %v122_v46 = vmul.f32 %v1825_v55, %v2147_v2  ;;  %v628_v29 = vmul.f32 0.2, %v596_v41  ;;  %v630_v38 = vmul.f32 0.2, %v598_v47  ;;  %v627_v61 = vmul.f32 0.2, %v595_v62 }
  0xe2   :  { %v600_v25 = vadd.f32 %v568_v12, %v468_v57  ;;  %v602_v63 = vadd.f32 %v570_v16, %v470_v24  ;;  %v599_v15 = vadd.f32 %v567_v56, %v467_v36  ;;  %v601_v59 = vadd.f32 %v569_v21, %v469_v58  ;;  %v489_v58 = vpop.permute.xlu0 %488 }
  0xe3   :  { %v629_v49 = vmul.f32 0.2, %v597_v39  ;;  %v191_v55 = vadd.f32 %v2035_v13, %v119_v0  ;;  %v660_v11 = vmax.f32 %v596_v41, %v628_v29  ;;  %v662_v23 = vmax.f32 %v598_v47, %v630_v38 }
  0xe4   :  { %v225_v26 = vpop.permute.xlu1 %224  ;;  %v632_v3 = vmul.f32 0.2, %v600_v25  ;;  %v634_v27 = vmul.f32 0.2, %v602_v63  ;;  %v631_v17 = vmul.f32 0.2, %v599_v15  ;;  %v192_v19 = vadd.f32 %v2035_v13, %v120_v9 }
  0xe5   :  { %v633_v20 = vmul.f32 0.2, %v601_v59  ;;  %v291_v53 = vmul.f32 %v1843_v5, %v225_v26  ;;  %v292_v10 = vmul.f32 %v1845_v6, %v225_v26  ;;  %v293_v54 = vmul.f32 %v1847_v7, %v225_v26 }
  0xe6   :  { %v664_v34 = vmax.f32 %v600_v25, %v632_v3  ;;  %v666_v4 = vmax.f32 %v602_v63, %v634_v27  ;;  %v663_v52 = vmax.f32 %v599_v15, %v631_v17  ;;  %v294_v45 = vmul.f32 %v1849_v8, %v225_v26 }
  0xe7   :  { %v665_v1 = vmax.f32 %v601_v59, %v633_v20  ;;  %v193_v5 = vadd.f32 %v2035_v13, %v121_v14  ;;  %v194_v6 = vadd.f32 %v2035_v13, %v122_v46  ;;  %v659_v48 = vmax.f32 %v595_v62, %v627_v61 }
  0xe8   :  { %868 = vmatprep.subr.mxu0 %v664_v34  ;;  %1029 = vmatprep.subr.mxu1 %v666_v4  ;;  %v661_v7 = vmax.f32 %v597_v39, %v629_v49  ;;  %v323_v8 = vadd.f32 %v291_v53, %v191_v55  ;;  %v324_v36 = vadd.f32 %v292_v10, %v192_v19  ;;  %v685_v19 = vld [vmem:[%s2431_s3 + $0x10] sm:$0xff] }
  0xe9   :  { %v361_v2 = vpop.permute.xlu1 %360  ;;  %869 = vmatpush1.msra.mxu0 %v663_v52  ;;  %1030 = vmatpush1.msra.mxu1 %v665_v1  ;;  %v325_v22 = vadd.f32 %v293_v54, %v193_v5  ;;  %v326_v57 = vadd.f32 %v294_v45, %v194_v6  ;;  %v556_v47 = vmul.f32 %v1885_v40, %v489_v58  ;;  %v686_v5 = vld [vmem:[%s2431_s3 + $0x18] sm:$0xff]  ;;  %v687_v6 = vld [vmem:[%s2431_s3 + $0x20] sm:$0xff] }
  0xea   :  { %870 = vmatprep.subr.mxu0 %v660_v11  ;;  %1031 = vmatprep.subr.mxu1 %v662_v23  ;;  %v427_v24 = vmul.f32 %v1867_v30, %v361_v2  ;;  %v428_v18 = vmul.f32 %v1869_v31, %v361_v2  ;;  %v429_v51 = vmul.f32 %v1871_v33, %v361_v2  ;;  %v2436_v11 = vmov 0.0   ;;  %v684_v23 = vld [vmem:[%s2431_s3 + $0x8] sm:$0xff] }
  0xeb   :  { %871 = vmatpush1.msra.mxu0 %v659_v48  ;;  %v430_v56 = vmul.f32 %v1873_v35, %v361_v2  ;;  %1032 = vmatpush1.msra.mxu1 %v661_v7  ;;  %v558_v62 = vmul.f32 %v1887_v42, %v489_v58  ;;  %v683_v2 = vld [vmem:[%s2431_s3] sm:$0xff]  ;;  %v688_v48 = vld [vmem:[%s2431_s3 + $0x28] sm:$0xff]  ;;  %v689_v7 = vld [vmem:[%s2431_s3 + $0x30] sm:$0xff] }
  0xec   :  { %v459_v0 = vadd.f32 %v427_v24, %v2179_v37  ;;  %v460_v9 = vadd.f32 %v428_v18, %v2181_v50  ;;  %v695_v24 = vld [vmem:[%s2431_s3 + $0x60] sm:$0xff]  ;;  %v696_v18 = vld [vmem:[%s2431_s3 + $0x68] sm:$0xff] }
  0xed   :  { %v357_v13 = vpop.permute.xlu1 %356 }
  0xee   :  { %v423_v12 = vmul.f32 %v1867_v30, %v357_v13  ;;  %v424_v21 = vmul.f32 %v1869_v31, %v357_v13  ;;  %v425_v16 = vmul.f32 %v1871_v33, %v357_v13  ;;  %v426_v41 = vmul.f32 %v1873_v35, %v357_v13 }
  0xef   :  { %v555_v30 = vmul.f32 %v1889_v43, %v489_v58  ;;  %v557_v31 = vmul.f32 %v1891_v44, %v489_v58  ;;  %v461_v33 = vadd.f32 %v429_v51, %v2183_v32  ;;  %v462_v35 = vadd.f32 %v430_v56, %v2185_v60  ;;  %v694_v58 = vld [vmem:[%s2431_s3 + $0x58] sm:$0xff]  ;;  %v697_v51 = vld [vmem:[%s2431_s3 + $0x70] sm:$0xff] }
  0xf0   :  { %v455_v25 = vadd.f32 %v423_v12, %v323_v8  ;;  %v456_v63 = vadd.f32 %v424_v21, %v324_v36  ;;  %v457_v15 = vadd.f32 %v425_v16, %v325_v22  ;;  %v458_v59 = vadd.f32 %v426_v41, %v326_v57  ;;  %v690_v8 = vld [vmem:[%s2431_s3 + $0x38] sm:$0xff]  ;;  %v691_v36 = vld [vmem:[%s2431_s3 + $0x40] sm:$0xff]  ;;  %v692_v22 = vld [vmem:[%s2431_s3 + $0x48] sm:$0xff]  ;;  %v723_v12 = vpop.permute.xlu0 %722 }
  0xf1   :  { %v693_v57 = vld [vmem:[%s2431_s3 + $0x50] sm:$0xff]  ;;  %v698_v56 = vld [vmem:[%s2431_s3 + $0x78] sm:$0xff] }
  0xf2   :  { %v493_v39 = vpop.permute.xlu1 %492  ;;  %v588_v14 = vadd.f32 %v556_v47, %v456_v63  ;;  %v590_v26 = vadd.f32 %v558_v62, %v458_v59  ;;  %v587_v50 = vadd.f32 %v555_v30, %v455_v25  ;;  %v589_v46 = vadd.f32 %v557_v31, %v457_v15 }
  0xf3   :  { %v559_v3 = vmul.f32 %v1889_v43, %v493_v39  ;;  %v560_v27 = vmul.f32 %v1885_v40, %v493_v39  ;;  %v561_v17 = vmul.f32 %v1891_v44, %v493_v39  ;;  %v562_v37 = vmul.f32 %v1887_v42, %v493_v39 }
  0xf4   :  { %v620_v32 = vmul.f32 0.2, %v588_v14  ;;  %v622_v4 = vmul.f32 0.2, %v590_v26  ;;  %v619_v10 = vmul.f32 0.2, %v587_v50  ;;  %v2349_v16 = vpop.permute.xlu0 %737 }
  0xf5   :  { %v592_v29 = vadd.f32 %v560_v27, %v460_v9  ;;  %v594_v38 = vadd.f32 %v562_v37, %v462_v35  ;;  %v591_v61 = vadd.f32 %v559_v3, %v459_v0  ;;  %v593_v34 = vadd.f32 %v561_v17, %v461_v33 }
  0xf6   :  { %v621_v43 = vmul.f32 0.2, %v589_v46  ;;  %v652_v42 = vmax.f32 %v588_v14, %v620_v32  ;;  %v654_v45 = vmax.f32 %v590_v26, %v622_v4  ;;  %v651_v1 = vmax.f32 %v587_v50, %v619_v10 }
  0xf7   :  { %v624_v60 = vmul.f32 0.2, %v592_v29  ;;  %v626_v52 = vmul.f32 0.2, %v594_v38  ;;  %v623_v20 = vmul.f32 0.2, %v591_v61  ;;  %v718_v13 = vpop.permute.xlu1 %717 }
  0xf8   :  { %v625_v53 = vmul.f32 0.2, %v593_v34  ;;  %v653_v55 = vmax.f32 %v589_v46, %v621_v43  ;;  %v1318_v47 = vpop.permute.xlu0 %1317 }
  0xf9   :  { %v656_v49 = vmax.f32 %v592_v29, %v624_v60  ;;  %v658_v40 = vmax.f32 %v594_v38, %v626_v52  ;;  %v655_v54 = vmax.f32 %v591_v61, %v623_v20 }
  0xfa   :  { %v657_v44 = vmax.f32 %v593_v34, %v625_v53 }
  0xfb   :  { %872 = vmatprep.subr.mxu0 %v656_v49  ;;  %1033 = vmatprep.subr.mxu1 %v658_v40  ;;  %v728_v21 = vpop.permute.xlu1 %727 }
  0xfc   :  { %873 = vmatpush1.msra.mxu0 %v655_v54  ;;  %1034 = vmatpush1.msra.mxu1 %v657_v44 }
  0xfd   :  { %874 = vmatprep.subr.mxu0 %v652_v42  ;;  %1035 = vmatprep.subr.mxu1 %v654_v45 }
  0xfe   :  { %875 = vmatpush1.msra.mxu0 %v651_v1  ;;  %1036 = vmatpush1.msra.mxu1 %v653_v55 }
  0xff   :  { %1576 = vmatmul.mubr.msk.f32.vlgmr.msra.gmra.mxu0 %vm795_vm0, %v683_v2  ;;  %1592 = vmatmul.mubr.msk.f32.vlgmr.msra.gmra.mxu1 %vm795_vm0, %v683_v2  ;;  %v2351_v41 = vpop.permute.xlu1 %732 }
 0x100   :  { %914 = vmatprep.mubr.f32.mxu0 %v2436_v11  ;;  %1075 = vmatprep.mubr.f32.mxu1 %v2436_v11 }
 0x103   :  { %1577 = vmatmul.mubr.msk.f32.gmra.mxu0 %vm795_vm0, %v684_v23  ;;  %1593 = vmatmul.mubr.msk.f32.gmra.mxu1 %vm795_vm0, %v684_v23  ;;  %v1313_v63 = vpop.permute.xlu1 %1312 }
 0x104   :  { %920 = vmatprep.mubr.f32.mxu0 %v2436_v11  ;;  %1081 = vmatprep.mubr.f32.mxu1 %v2436_v11 }
 0x107   :  { %1578 = vmatmul.mubr.msk.f32.gmra.mxu0 %vm795_vm0, %v685_v19  ;;  %1594 = vmatmul.mubr.msk.f32.gmra.mxu1 %vm795_vm0, %v685_v19  ;;  %v2355_v29 = vpop.permute.xlu1 %742 }
 0x108   :  { %926 = vmatprep.mubr.f32.mxu0 %v2436_v11  ;;  %1087 = vmatprep.mubr.f32.mxu1 %v2436_v11 }
 0x109   :  { %v2353_v26 = vpop.permute.xlu0 %1322 }
 0x10b   :  { %1579 = vmatmul.mubr.msk.f32.gmra.mxu0 %vm795_vm0, %v686_v5  ;;  %1595 = vmatmul.mubr.msk.f32.gmra.mxu1 %vm795_vm0, %v686_v5 }
 0x10c   :  { %932 = vmatprep.mubr.f32.mxu0 %v2436_v11  ;;  %1093 = vmatprep.mubr.f32.mxu1 %v2436_v11 }
 0x10f   :  { %1580 = vmatmul.mubr.msk.f32.gmra.mxu0 %vm795_vm0, %v687_v6  ;;  %1596 = vmatmul.mubr.msk.f32.gmra.mxu1 %vm795_vm0, %v687_v6 }
 0x110   :  { %938 = vmatprep.mubr.f32.mxu0 %v2436_v11  ;;  %1099 = vmatprep.mubr.f32.mxu1 %v2436_v11 }
 0x113   :  { %1581 = vmatmul.mubr.msk.f32.gmra.mxu0 %vm795_vm0, %v688_v48  ;;  %1597 = vmatmul.mubr.msk.f32.gmra.mxu1 %vm795_vm0, %v688_v48 }
 0x114   :  { %944 = vmatprep.mubr.f32.mxu0 %v2436_v11  ;;  %1105 = vmatprep.mubr.f32.mxu1 %v2436_v11 }
 0x116   :  { %v2357_v55 = vpop.permute.xlu0 %1327 }
 0x117   :  { %1582 = vmatmul.mubr.msk.f32.gmra.mxu0 %vm795_vm0, %v689_v7  ;;  %1598 = vmatmul.mubr.msk.f32.gmra.mxu1 %vm795_vm0, %v689_v7 }
 0x118   :  { %950 = vmatprep.mubr.f32.mxu0 %v2436_v11  ;;  %1111 = vmatprep.mubr.f32.mxu1 %v2436_v11 }
 0x11b   :  { %1583 = vmatmul.mubr.msk.f32.gmra.mxu0 %vm795_vm0, %v690_v8  ;;  %1599 = vmatmul.mubr.msk.f32.gmra.mxu1 %vm795_vm0, %v690_v8 }
 0x11c   :  { %956 = vmatprep.mubr.f32.mxu0 %v2436_v11  ;;  %1117 = vmatprep.mubr.f32.mxu1 %v2436_v11 }
 0x11f   :  { %1584 = vmatmul.mubr.msk.f32.gmra.mxu0 %vm795_vm0, %v691_v36  ;;  %1600 = vmatmul.mubr.msk.f32.gmra.mxu1 %vm795_vm0, %v691_v36 }
 0x120   :  { %962 = vmatprep.mubr.f32.mxu0 %v2436_v11  ;;  %1123 = vmatprep.mubr.f32.mxu1 %v2436_v11 }
 0x123   :  { %1585 = vmatmul.mubr.msk.f32.gmra.mxu0 %vm795_vm0, %v692_v22  ;;  %1601 = vmatmul.mubr.msk.f32.gmra.mxu1 %vm795_vm0, %v692_v22  ;;  %v2359_v22 = vpop.permute.xlu1 %747 }
 0x124   :  { %968 = vmatprep.mubr.f32.mxu0 %v2436_v11  ;;  %1129 = vmatprep.mubr.f32.mxu1 %v2436_v11 }
 0x127   :  { %1586 = vmatmul.mubr.msk.f32.gmra.mxu0 %vm795_vm0, %v693_v57  ;;  %1602 = vmatmul.mubr.msk.f32.gmra.mxu1 %vm795_vm0, %v693_v57 }
 0x128   :  { %974 = vmatprep.mubr.f32.mxu0 %v2436_v11  ;;  %1135 = vmatprep.mubr.f32.mxu1 %v2436_v11 }
 0x12b   :  { %1587 = vmatmul.mubr.msk.f32.gmra.mxu0 %vm795_vm0, %v694_v58  ;;  %1603 = vmatmul.mubr.msk.f32.gmra.mxu1 %vm795_vm0, %v694_v58 }
 0x12c   :  { %980 = vmatprep.mubr.f32.mxu0 %v2436_v11  ;;  %1141 = vmatprep.mubr.f32.mxu1 %v2436_v11 }
 0x12f   :  { %1588 = vmatmul.mubr.msk.f32.gmra.mxu0 %vm795_vm0, %v695_v24  ;;  %1604 = vmatmul.mubr.msk.f32.gmra.mxu1 %vm795_vm0, %v695_v24 }
 0x130   :  { %986 = vmatprep.mubr.f32.mxu0 %v2436_v11  ;;  %1147 = vmatprep.mubr.f32.mxu1 %v2436_v11 }
 0x133   :  { %1589 = vmatmul.mubr.msk.f32.gmra.mxu0 %vm795_vm0, %v696_v18  ;;  %1605 = vmatmul.mubr.msk.f32.gmra.mxu1 %vm795_vm0, %v696_v18 }
 0x134   :  { %992 = vmatprep.mubr.f32.mxu0 %v2436_v11  ;;  %1153 = vmatprep.mubr.f32.mxu1 %v2436_v11 }
 0x137   :  { %1590 = vmatmul.mubr.msk.f32.gmra.mxu0 %vm795_vm0, %v697_v51  ;;  %1606 = vmatmul.mubr.msk.f32.gmra.mxu1 %vm795_vm0, %v697_v51 }
 0x138   :  { %998 = vmatprep.mubr.f32.mxu0 %v2436_v11  ;;  %1159 = vmatprep.mubr.f32.mxu1 %v2436_v11 }
 0x13b   :  { %1591 = vmatmul.mubr.msk.f32.gmra.mxu0 %vm795_vm0, %v698_v56  ;;  %1607 = vmatmul.mubr.msk.f32.gmra.mxu1 %vm795_vm0, %v698_v56 }
 0x1bf   :  { %v910_v62 = vpop.f32.mrf.mxu0  ;;  %v1071_v25 = vpop.f32.mrf.mxu1 }
 0x1c0   :  { %v911_v15 = vadd.f32 %v910_v62, %v718_v13  ;;  %v1072_v59 = vadd.f32 %v1071_v25, %v718_v13 }
 0x1c1   :  { %v912_v0 = vpop.f32.mrf.mxu0  ;;  %v1073_v9 = vpop.f32.mrf.mxu1 }
 0x1c2   :  { %v1166_v30 = vmul.f32 0.2, %v911_v15  ;;  %v1168_v31 = vmul.f32 0.2, %v1072_v59  ;;  %v913_v33 = vadd.f32 %v912_v0, %v718_v13  ;;  %v1074_v35 = vadd.f32 %v1073_v9, %v718_v13 }
 0x1c3   :  { %v916_v39 = vpop.f32.mrf.mxu0  ;;  %v1077_v14 = vpop.f32.mrf.mxu1 }
 0x1c4   :  { %v1167_v3 = vmul.f32 0.2, %v913_v33  ;;  %v1169_v27 = vmul.f32 0.2, %v1074_v35  ;;  %v917_v17 = vadd.f32 %v916_v39, %v723_v12  ;;  %v1078_v37 = vadd.f32 %v1077_v14, %v723_v12  ;;  %v2363_v14 = vpop.permute.xlu0 %1332 }
 0x1c5   :  { %v918_v50 = vpop.f32.mrf.mxu0  ;;  %v1079_v46 = vpop.f32.mrf.mxu1  ;;  %v1230_v38 = vmax.f32 %v911_v15, %v1166_v30  ;;  %v1232_v61 = vmax.f32 %v1072_v59, %v1168_v31 }
 0x1c6   :  { %v1170_v34 = vmul.f32 0.2, %v917_v17  ;;  %v1172_v32 = vmul.f32 0.2, %v1078_v37  ;;  %v919_v4 = vadd.f32 %v918_v50, %v723_v12  ;;  %v1080_v60 = vadd.f32 %v1079_v46, %v723_v12 }
 0x1c7   :  { %v922_v52 = vpop.f32.mrf.mxu0  ;;  %v1083_v20 = vpop.f32.mrf.mxu1  ;;  %v1231_v53 = vmax.f32 %v913_v33, %v1167_v3  ;;  %v1233_v10 = vmax.f32 %v1074_v35, %v1169_v27  ;;  %v1390_v51 = vmul.f32 %v1313_v63, %v1230_v38  ;;  %v1392_v56 = vmul.f32 %v1313_v63, %v1232_v61 }
 0x1c8   :  { %v923_v43 = vadd.f32 %v922_v52, %v728_v21  ;;  %v1084_v49 = vadd.f32 %v1083_v20, %v728_v21  ;;  %v1234_v40 = vmax.f32 %v917_v17, %v1170_v34  ;;  %v1236_v54 = vmax.f32 %v1078_v37, %v1172_v32  ;;  %v2369_v34 = vpop.permute.xlu1 %752 }
 0x1c9   :  { %v1171_v44 = vmul.f32 0.2, %v919_v4  ;;  %v1173_v42 = vmul.f32 0.2, %v1080_v60  ;;  %v924_v45 = vpop.f32.mrf.mxu0  ;;  %v1085_v1 = vpop.f32.mrf.mxu1  ;;  %v1391_v15 = vmul.f32 %v1313_v63, %v1231_v53 }
 0x1ca   :  { %v1174_v2 = vmul.f32 0.2, %v923_v43  ;;  %v1176_v11 = vmul.f32 0.2, %v1084_v49  ;;  %v925_v23 = vadd.f32 %v924_v45, %v728_v21  ;;  %v1086_v19 = vadd.f32 %v1085_v1, %v728_v21 }
 0x1cb   :  { %v1394_v5 = vmul.f32 %v1318_v47, %v1234_v40  ;;  %v1396_v6 = vmul.f32 %v1318_v47, %v1236_v54  ;;  %v1235_v48 = vmax.f32 %v919_v4, %v1171_v44  ;;  %v1237_v7 = vmax.f32 %v1080_v60, %v1173_v42  ;;  %v928_v8 = vpop.f32.mrf.mxu0  ;;  %v1089_v36 = vpop.f32.mrf.mxu1 }
 0x1cc   :  { %v1238_v57 = vmax.f32 %v923_v43, %v1174_v2  ;;  %v1240_v58 = vmax.f32 %v1084_v49, %v1176_v11  ;;  %v1175_v24 = vmul.f32 0.2, %v925_v23  ;;  %v1177_v18 = vmul.f32 0.2, %v1086_v19 }
 0x1cd   :  { %v1395_v13 = vmul.f32 %v1318_v47, %v1235_v48  ;;  %v1397_v12 = vmul.f32 %v1318_v47, %v1237_v7  ;;  %v930_v62 = vpop.f32.mrf.mxu0  ;;  %v1091_v25 = vpop.f32.mrf.mxu1  ;;  %v1393_v21 = vmul.f32 %v1313_v63, %v1233_v10  ;;  %v1454_v9 = vadd.f32 %v1394_v5, %v1390_v51 }
 0x1ce   :  { %v1239_v59 = vmax.f32 %v925_v23, %v1175_v24  ;;  %v1241_v0 = vmax.f32 %v1086_v19, %v1177_v18  ;;  %v1496_v30 = vadd.f32 %v1396_v6, %v1392_v56  ;;  %v929_v31 = vadd.f32 %v928_v8, %v2351_v41  ;;  %v1338_v19 = vpop.permute.xlu0 %1337  ;;  %v2381_v18 = vpop.permute.xlu1 %757 }
 0x1cf   :  { %v1090_v33 = vadd.f32 %v1089_v36, %v2351_v41  ;;  %v934_v35 = vpop.f32.mrf.mxu0  ;;  %v1095_v39 = vpop.f32.mrf.mxu1  ;;  %v1475_v3 = vadd.f32 %v1395_v13, %v1391_v15  ;;  %v1517_v27 = vadd.f32 %v1397_v12, %v1393_v21  ;;  %v1398_v47 = vmul.f32 %v2353_v26, %v1238_v57 }
 0x1d0   :  { %v1400_v17 = vmul.f32 %v2353_v26, %v1240_v58  ;;  %v1178_v37 = vmul.f32 0.2, %v929_v31  ;;  %v931_v50 = vadd.f32 %v930_v62, %v2351_v41  ;;  %v1092_v46 = vadd.f32 %v1091_v25, %v2351_v41 }
 0x1d1   :  { %v1180_v63 = vmul.f32 0.2, %v1090_v33  ;;  %v936_v38 = vpop.f32.mrf.mxu0  ;;  %v1097_v61 = vpop.f32.mrf.mxu1  ;;  %v1399_v32 = vmul.f32 %v2353_v26, %v1239_v59  ;;  %v1401_v4 = vmul.f32 %v2353_v26, %v1241_v0  ;;  %v935_v60 = vadd.f32 %v934_v35, %v2349_v16 }
 0x1d2   :  { %v1096_v52 = vadd.f32 %v1095_v39, %v2349_v16  ;;  %v1242_v20 = vmax.f32 %v929_v31, %v1178_v37  ;;  %v1179_v10 = vmul.f32 0.2, %v931_v50  ;;  %v1181_v43 = vmul.f32 0.2, %v1092_v46 }
 0x1d3   :  { %v1244_v53 = vmax.f32 %v1090_v33, %v1180_v63  ;;  %v940_v49 = vpop.f32.mrf.mxu0  ;;  %v1101_v40 = vpop.f32.mrf.mxu1  ;;  %v1182_v54 = vmul.f32 0.2, %v935_v60  ;;  %v937_v44 = vadd.f32 %v936_v38, %v2349_v16  ;;  %v1098_v42 = vadd.f32 %v1097_v61, %v2349_v16 }
 0x1d4   :  { %v1184_v41 = vmul.f32 0.2, %v1096_v52  ;;  %v1402_v45 = vmul.f32 %v2357_v55, %v1242_v20  ;;  %v1243_v1 = vmax.f32 %v931_v50, %v1179_v10  ;;  %v1245_v2 = vmax.f32 %v1092_v46, %v1181_v43  ;;  %v2393_v20 = vpop.permute.xlu1 %762 }
 0x1d5   :  { %v1404_v26 = vmul.f32 %v2357_v55, %v1244_v53  ;;  %v942_v11 = vpop.f32.mrf.mxu0  ;;  %v1103_v23 = vpop.f32.mrf.mxu1  ;;  %v1246_v5 = vmax.f32 %v935_v60, %v1182_v54  ;;  %v1183_v48 = vmul.f32 0.2, %v937_v44  ;;  %v1185_v7 = vmul.f32 0.2, %v1098_v42 }
 0x1d6   :  { %v1248_v6 = vmax.f32 %v1096_v52, %v1184_v41  ;;  %v1455_v8 = vadd.f32 %v1454_v9, %v1398_v47  ;;  %v1497_v36 = vadd.f32 %v1496_v30, %v1400_v17  ;;  %v1403_v57 = vmul.f32 %v2357_v55, %v1243_v1  ;;  %v1343_v17 = vpop.permute.xlu0 %1342 }
 0x1d7   :  { %v1405_v58 = vmul.f32 %v2357_v55, %v1245_v2  ;;  %v946_v16 = vpop.f32.mrf.mxu0  ;;  %v1107_v24 = vpop.f32.mrf.mxu1  ;;  %v1476_v51 = vadd.f32 %v1475_v3, %v1399_v32  ;;  %v1518_v56 = vadd.f32 %v1517_v27, %v1401_v4  ;;  %v1247_v13 = vmax.f32 %v937_v44, %v1183_v48 }
 0x1d8   :  { %v1249_v12 = vmax.f32 %v1098_v42, %v1185_v7  ;;  %v1456_v62 = vadd.f32 %v1455_v8, %v1402_v45  ;;  %v1498_v25 = vadd.f32 %v1497_v36, %v1404_v26  ;;  %v941_v15 = vadd.f32 %v940_v49, %v2355_v29 }
 0x1d9   :  { %v1102_v21 = vadd.f32 %v1101_v40, %v2355_v29  ;;  %v948_v59 = vpop.f32.mrf.mxu0  ;;  %v1109_v0 = vpop.f32.mrf.mxu1  ;;  %v1477_v9 = vadd.f32 %v1476_v51, %v1403_v57  ;;  %v1519_v30 = vadd.f32 %v1518_v56, %v1405_v58  ;;  %v1406_v55 = vmul.f32 %v2363_v14, %v1246_v5 }
 0x1da   :  { %v1408_v31 = vmul.f32 %v2363_v14, %v1248_v6  ;;  %v1186_v33 = vmul.f32 0.2, %v941_v15  ;;  %v943_v39 = vadd.f32 %v942_v11, %v2355_v29  ;;  %v1104_v3 = vadd.f32 %v1103_v23, %v2355_v29  ;;  %v1348_v7 = vpop.permute.xlu0 %1347 }
 0x1db   :  { %v1188_v35 = vmul.f32 0.2, %v1102_v21  ;;  %v952_v27 = vpop.f32.mrf.mxu0  ;;  %v1113_v47 = vpop.f32.mrf.mxu1  ;;  %v1407_v37 = vmul.f32 %v2363_v14, %v1247_v13  ;;  %v1409_v63 = vmul.f32 %v2363_v14, %v1249_v12  ;;  %v947_v50 = vadd.f32 %v946_v16, %v2359_v22 }
 0x1dc   :  { %v1108_v46 = vadd.f32 %v1107_v24, %v2359_v22  ;;  %v1250_v38 = vmax.f32 %v941_v15, %v1186_v33  ;;  %v1187_v32 = vmul.f32 0.2, %v943_v39  ;;  %v1189_v4 = vmul.f32 0.2, %v1104_v3  ;;  %v2399_v12 = vpop.permute.xlu1 %767 }
 0x1dd   :  { %v1252_v61 = vmax.f32 %v1102_v21, %v1188_v35  ;;  %v954_v60 = vpop.f32.mrf.mxu0  ;;  %v1115_v52 = vpop.f32.mrf.mxu1  ;;  %v1190_v29 = vmul.f32 0.2, %v947_v50  ;;  %v949_v10 = vadd.f32 %v948_v59, %v2359_v22  ;;  %v1110_v43 = vadd.f32 %v1109_v0, %v2359_v22 }
 0x1de   :  { %v1192_v53 = vmul.f32 0.2, %v1108_v46  ;;  %v1410_v49 = vmul.f32 %v1338_v19, %v1250_v38  ;;  %v1251_v40 = vmax.f32 %v943_v39, %v1187_v32  ;;  %v1253_v54 = vmax.f32 %v1104_v3, %v1189_v4 }
 0x1df   :  { %v1412_v14 = vmul.f32 %v1338_v19, %v1252_v61  ;;  %v958_v41 = vpop.f32.mrf.mxu0  ;;  %v1119_v44 = vpop.f32.mrf.mxu1  ;;  %v1254_v42 = vmax.f32 %v947_v50, %v1190_v29  ;;  %v1191_v26 = vmul.f32 0.2, %v949_v10  ;;  %v1193_v1 = vmul.f32 0.2, %v1110_v43 }
 0x1e0   :  { %v1256_v45 = vmax.f32 %v1108_v46, %v1192_v53  ;;  %v1457_v2 = vadd.f32 %v1456_v62, %v1406_v55  ;;  %v1499_v11 = vadd.f32 %v1498_v25, %v1408_v31  ;;  %v1411_v23 = vmul.f32 %v1338_v19, %v1251_v40  ;;  %v1353_v46 = vpop.permute.xlu0 %1352 }
 0x1e1   :  { %v1413_v5 = vmul.f32 %v1338_v19, %v1253_v54  ;;  %v960_v6 = vpop.f32.mrf.mxu0  ;;  %v1121_v48 = vpop.f32.mrf.mxu1  ;;  %v1478_v8 = vadd.f32 %v1477_v9, %v1407_v37  ;;  %v1520_v36 = vadd.f32 %v1519_v30, %v1409_v63  ;;  %v1255_v22 = vmax.f32 %v949_v10, %v1191_v26 }
 0x1e2   :  { %v1257_v57 = vmax.f32 %v1110_v43, %v1193_v1  ;;  %v1458_v58 = vadd.f32 %v1457_v2, %v1410_v49  ;;  %v1500_v16 = vadd.f32 %v1499_v11, %v1412_v14  ;;  %v953_v24 = vadd.f32 %v952_v27, %v2369_v34  ;;  %v2407_v10 = vpop.permute.xlu1 %772 }
 0x1e3   :  { %v1114_v51 = vadd.f32 %v1113_v47, %v2369_v34  ;;  %v964_v56 = vpop.f32.mrf.mxu0  ;;  %v1125_v13 = vpop.f32.mrf.mxu1  ;;  %v1479_v62 = vadd.f32 %v1478_v8, %v1411_v23  ;;  %v1521_v25 = vadd.f32 %v1520_v36, %v1413_v5  ;;  %v1414_v19 = vmul.f32 %v1343_v17, %v1254_v42 }
 0x1e4   :  { %v1416_v15 = vmul.f32 %v1343_v17, %v1256_v45  ;;  %v1194_v21 = vmul.f32 0.2, %v953_v24  ;;  %v955_v0 = vadd.f32 %v954_v60, %v2369_v34  ;;  %v1116_v9 = vadd.f32 %v1115_v52, %v2369_v34 }
 0x1e5   :  { %v1196_v59 = vmul.f32 0.2, %v1114_v51  ;;  %v966_v30 = vpop.f32.mrf.mxu0  ;;  %v1127_v55 = vpop.f32.mrf.mxu1  ;;  %v1415_v31 = vmul.f32 %v1343_v17, %v1255_v22  ;;  %v1417_v33 = vmul.f32 %v1343_v17, %v1257_v57  ;;  %v959_v35 = vadd.f32 %v958_v41, %v2381_v18 }
 0x1e6   :  { %v1120_v39 = vadd.f32 %v1119_v44, %v2381_v18  ;;  %v1258_v3 = vmax.f32 %v953_v24, %v1194_v21  ;;  %v1195_v47 = vmul.f32 0.2, %v955_v0  ;;  %v1197_v37 = vmul.f32 0.2, %v1116_v9  ;;  %v1358_v22 = vpop.permute.xlu0 %1357 }
 0x1e7   :  { %v1260_v27 = vmax.f32 %v1114_v51, %v1196_v59  ;;  %v970_v63 = vpop.f32.mrf.mxu0  ;;  %v1131_v50 = vpop.f32.mrf.mxu1  ;;  %v1198_v38 = vmul.f32 0.2, %v959_v35  ;;  %v961_v32 = vadd.f32 %v960_v6, %v2381_v18  ;;  %v1122_v34 = vadd.f32 %v1121_v48, %v2381_v18 }
 0x1e8   :  { %v1200_v61 = vmul.f32 0.2, %v1120_v39  ;;  %v1418_v4 = vmul.f32 %v1348_v7, %v1258_v3  ;;  %v1259_v17 = vmax.f32 %v955_v0, %v1195_v47  ;;  %v1261_v52 = vmax.f32 %v1116_v9, %v1197_v37  ;;  %v778_v0 = vpop.permute.xlu1 %777 }
 0x1e9   :  { %v1420_v60 = vmul.f32 %v1348_v7, %v1260_v27  ;;  %v972_v29 = vpop.f32.mrf.mxu0  ;;  %v1133_v53 = vpop.f32.mrf.mxu1  ;;  %v1262_v43 = vmax.f32 %v959_v35, %v1198_v38  ;;  %v1199_v14 = vmul.f32 0.2, %v961_v32  ;;  %v1201_v40 = vmul.f32 0.2, %v1122_v34 }
 0x1ea   :  { %v1264_v49 = vmax.f32 %v1120_v39, %v1200_v61  ;;  %v1459_v54 = vadd.f32 %v1458_v58, %v1414_v19  ;;  %v1501_v41 = vadd.f32 %v1500_v16, %v1416_v15  ;;  %v1419_v44 = vmul.f32 %v1348_v7, %v1259_v17 }
 0x1eb   :  { %v1421_v42 = vmul.f32 %v1348_v7, %v1261_v52  ;;  %v976_v45 = vpop.f32.mrf.mxu0  ;;  %v1137_v26 = vpop.f32.mrf.mxu1  ;;  %v1480_v1 = vadd.f32 %v1479_v62, %v1415_v31  ;;  %v1522_v18 = vadd.f32 %v1521_v25, %v1417_v33  ;;  %v1263_v2 = vmax.f32 %v961_v32, %v1199_v14 }
 0x1ec   :  { %v1265_v11 = vmax.f32 %v1122_v34, %v1201_v40  ;;  %v1460_v23 = vadd.f32 %v1459_v54, %v1418_v4  ;;  %v1502_v5 = vadd.f32 %v1501_v41, %v1420_v60  ;;  %v965_v6 = vadd.f32 %v964_v56, %v2393_v20  ;;  %v1363_v34 = vpop.permute.xlu0 %1362 }
 0x1ed   :  { %v1126_v48 = vadd.f32 %v1125_v13, %v2393_v20  ;;  %v978_v8 = vpop.f32.mrf.mxu0  ;;  %v1139_v36 = vpop.f32.mrf.mxu1  ;;  %v1481_v57 = vadd.f32 %v1480_v1, %v1419_v44  ;;  %v1523_v58 = vadd.f32 %v1522_v18, %v1421_v42  ;;  %v1422_v16 = vmul.f32 %v1353_v46, %v1262_v43 }
 0x1ee   :  { %v1424_v24 = vmul.f32 %v1353_v46, %v1264_v49  ;;  %v1202_v7 = vmul.f32 0.2, %v965_v6  ;;  %v967_v62 = vadd.f32 %v966_v30, %v2393_v20  ;;  %v1128_v25 = vadd.f32 %v1127_v55, %v2393_v20 }
 0x1ef   :  { %v1204_v51 = vmul.f32 0.2, %v1126_v48  ;;  %v982_v19 = vpop.f32.mrf.mxu0  ;;  %v1143_v15 = vpop.f32.mrf.mxu1  ;;  %v1423_v21 = vmul.f32 %v1353_v46, %v1263_v2  ;;  %v1425_v59 = vmul.f32 %v1353_v46, %v1265_v11  ;;  %v971_v56 = vadd.f32 %v970_v63, %v2399_v12 }
 0x1f0   :  { %v1132_v13 = vadd.f32 %v1131_v50, %v2399_v12  ;;  %v1266_v9 = vmax.f32 %v965_v6, %v1202_v7  ;;  %v1203_v33 = vmul.f32 0.2, %v967_v62  ;;  %v1205_v35 = vmul.f32 0.2, %v1128_v25 }
 0x1f1   :  { %v1268_v31 = vmax.f32 %v1126_v48, %v1204_v51  ;;  %v1206_v39 = vmul.f32 0.2, %v971_v56  ;;  %v973_v27 = vadd.f32 %v972_v29, %v2399_v12  ;;  %v1134_v30 = vadd.f32 %v1133_v53, %v2399_v12  ;;  %v984_v20 = vpop.f32.mrf.mxu0  ;;  %v1145_v55 = vpop.f32.mrf.mxu1 }
 0x1f2   :  { %v1208_v3 = vmul.f32 0.2, %v1132_v13  ;;  %v1426_v47 = vmul.f32 %v1358_v22, %v1266_v9  ;;  %v1267_v46 = vmax.f32 %v967_v62, %v1203_v33  ;;  %v1269_v38 = vmax.f32 %v1128_v25, %v1205_v35  ;;  %v783_v12 = vpop.permute.xlu1 %782  ;;  %v1368_v62 = vpop.permute.xlu0 %1367 }
 0x1f3   :  { %v1428_v37 = vmul.f32 %v1358_v22, %v1268_v31  ;;  %v1270_v63 = vmax.f32 %v971_v56, %v1206_v39  ;;  %v1207_v50 = vmul.f32 0.2, %v973_v27  ;;  %v1209_v32 = vmul.f32 0.2, %v1134_v30  ;;  %v988_v29 = vpop.f32.mrf.mxu0  ;;  %v1149_v14 = vpop.f32.mrf.mxu1 }
 0x1f4   :  { %v1272_v61 = vmax.f32 %v1132_v13, %v1208_v3  ;;  %v1461_v4 = vadd.f32 %v1460_v23, %v1422_v16  ;;  %v1503_v60 = vadd.f32 %v1502_v5, %v1424_v24  ;;  %v1482_v17 = vadd.f32 %v1481_v57, %v1423_v21 }
 0x1f5   :  { %v1524_v52 = vadd.f32 %v1523_v58, %v1425_v59  ;;  %v1271_v43 = vmax.f32 %v973_v27, %v1207_v50  ;;  %v1273_v49 = vmax.f32 %v1134_v30, %v1209_v32  ;;  %v977_v54 = vadd.f32 %v976_v45, %v2407_v10  ;;  %v990_v16 = vpop.f32.mrf.mxu0  ;;  %v1151_v24 = vpop.f32.mrf.mxu1 }
 0x1f6   :  { %v1462_v53 = vadd.f32 %v1461_v4, %v1426_v47  ;;  %v1504_v40 = vadd.f32 %v1503_v60, %v1428_v37  ;;  %v1138_v41 = vadd.f32 %v1137_v26, %v2407_v10  ;;  %v1427_v44 = vmul.f32 %v1358_v22, %v1267_v46  ;;  %v788_v56 = vpop.permute.xlu1 %787  ;;  %v1373_v60 = vpop.permute.xlu0 %1372 }
 0x1f7   :  { %v1429_v42 = vmul.f32 %v1358_v22, %v1269_v38  ;;  %v1430_v1 = vmul.f32 %v1363_v34, %v1270_v63  ;;  %v1432_v18 = vmul.f32 %v1363_v34, %v1272_v61  ;;  %v1210_v2 = vmul.f32 0.2, %v977_v54  ;;  %v994_v33 = vpop.f32.mrf.mxu0  ;;  %v1155_v35 = vpop.f32.mrf.mxu1 }
 0x1f8   :  { %v1212_v11 = vmul.f32 0.2, %v1138_v41  ;;  %v979_v23 = vadd.f32 %v978_v8, %v2407_v10  ;;  %v1140_v5 = vadd.f32 %v1139_v36, %v2407_v10  ;;  %v1431_v6 = vmul.f32 %v1363_v34, %v1271_v43 }
 0x1f9   :  { %v1433_v48 = vmul.f32 %v1363_v34, %v1273_v49  ;;  %v983_v57 = vadd.f32 %v982_v19, %v778_v0  ;;  %v1144_v58 = vadd.f32 %v1143_v15, %v778_v0  ;;  %v1274_v7 = vmax.f32 %v977_v54, %v1210_v2  ;;  %v996_v32 = vpop.f32.mrf.mxu0  ;;  %v1157_v34 = vpop.f32.mrf.mxu1 }
 0x1fa   :  { %v1276_v45 = vmax.f32 %v1138_v41, %v1212_v11  ;;  %v1211_v51 = vmul.f32 0.2, %v979_v23  ;;  %v1213_v26 = vmul.f32 0.2, %v1140_v5  ;;  %v985_v21 = vadd.f32 %v984_v20, %v778_v0  ;;  %v793_v4 = vpop.permute.xlu1 %792 }
 0x1fb   :  { %v1214_v22 = vmul.f32 0.2, %v983_v57  ;;  %v1216_v25 = vmul.f32 0.2, %v1144_v58  ;;  %v1146_v59 = vadd.f32 %v1145_v55, %v778_v0  ;;  %v1483_v13 = vadd.f32 %v1482_v17, %v1427_v44 }
 0x1fc   :  { %v1525_v8 = vadd.f32 %v1524_v52, %v1429_v42  ;;  %v1434_v9 = vmul.f32 %v1368_v62, %v1274_v7  ;;  %v1436_v10 = vmul.f32 %v1368_v62, %v1276_v45  ;;  %v1275_v36 = vmax.f32 %v979_v23, %v1211_v51  ;;  %v1000_v23 = vpop.f32.mrf.mxu0 }
 0x1fd   :  { %v1277_v31 = vmax.f32 %v1140_v5, %v1213_v26  ;;  %v1215_v19 = vmul.f32 0.2, %v985_v21  ;;  %v1217_v15 = vmul.f32 0.2, %v1146_v59  ;;  %v1463_v39 = vadd.f32 %v1462_v53, %v1430_v1  ;;  %v1161_v5 = vpop.f32.mrf.mxu1 }
 0x1fe   :  { %v1505_v3 = vadd.f32 %v1504_v40, %v1432_v18  ;;  %v1484_v27 = vadd.f32 %v1483_v13, %v1431_v6  ;;  %v1526_v30 = vadd.f32 %v1525_v8, %v1433_v48  ;;  %v1278_v47 = vmax.f32 %v983_v57, %v1214_v22  ;;  %v1378_v45 = vpop.permute.xlu1 %1377 }
 0x1ff   :  { %v1280_v37 = vmax.f32 %v1144_v58, %v1216_v25  ;;  %v1464_v46 = vadd.f32 %v1463_v39, %v1434_v9  ;;  %v989_v0 = vadd.f32 %v988_v29, %v783_v12  ;;  %v1150_v55 = vadd.f32 %v1149_v14, %v783_v12  ;;  %v1163_v8 = vpop.f32.mrf.mxu1  ;;  %v1383_v9 = vpop.permute.xlu0 %1382 }
 0x200   :  { %v1506_v20 = vadd.f32 %v1505_v3, %v1436_v10  ;;  %v1435_v38 = vmul.f32 %v1368_v62, %v1275_v36  ;;  %v1437_v63 = vmul.f32 %v1368_v62, %v1277_v31  ;;  %v1279_v61 = vmax.f32 %v985_v21, %v1215_v19 }
 0x201   :  { %v1281_v50 = vmax.f32 %v1146_v59, %v1217_v15  ;;  %v1218_v17 = vmul.f32 0.2, %v989_v0  ;;  %v1220_v52 = vmul.f32 0.2, %v1150_v55  ;;  %v991_v43 = vadd.f32 %v990_v16, %v783_v12 }
 0x202   :  { %v1152_v49 = vadd.f32 %v1151_v24, %v783_v12  ;;  %v1438_v53 = vmul.f32 %v1373_v60, %v1278_v47  ;;  %v1440_v40 = vmul.f32 %v1373_v60, %v1280_v37  ;;  %v995_v54 = vadd.f32 %v994_v33, %v788_v56 }
 0x203   :  { %v1156_v41 = vadd.f32 %v1155_v35, %v788_v56  ;;  %v1282_v44 = vmax.f32 %v989_v0, %v1218_v17  ;;  %v1284_v42 = vmax.f32 %v1150_v55, %v1220_v52  ;;  %v1219_v29 = vmul.f32 0.2, %v991_v43 }
 0x204   :  { %v1221_v14 = vmul.f32 0.2, %v1152_v49  ;;  %v1222_v1 = vmul.f32 0.2, %v995_v54  ;;  %v997_v2 = vadd.f32 %v996_v32, %v788_v56  ;;  %v1158_v11 = vadd.f32 %v1157_v34, %v788_v56  ;;  %v1002_v56 = vpop.f32.mrf.mxu0 }
 0x205   :  { %v1224_v18 = vmul.f32 0.2, %v1156_v41  ;;  %v1439_v6 = vmul.f32 %v1373_v60, %v1279_v61  ;;  %v1441_v48 = vmul.f32 %v1373_v60, %v1281_v50  ;;  %v1283_v57 = vmax.f32 %v991_v43, %v1219_v29  ;;  %v1388_v50 = vpop.permute.xlu1 %1387 }
 0x206   :  { %v1285_v58 = vmax.f32 %v1152_v49, %v1221_v14  ;;  %v1286_v16 = vmax.f32 %v995_v54, %v1222_v1  ;;  %v1223_v24 = vmul.f32 0.2, %v997_v2  ;;  %v1225_v7 = vmul.f32 0.2, %v1158_v11 }
 0x207   :  { %v1288_v12 = vmax.f32 %v1156_v41, %v1224_v18  ;;  %v1485_v51 = vadd.f32 %v1484_v27, %v1435_v38  ;;  %v1527_v26 = vadd.f32 %v1526_v30, %v1437_v63  ;;  %v1465_v62 = vadd.f32 %v1464_v46, %v1438_v53 }
 0x208   :  { %v1507_v22 = vadd.f32 %v1506_v20, %v1440_v40  ;;  %v1442_v25 = vmul.f32 %v1378_v45, %v1282_v44  ;;  %v1444_v21 = vmul.f32 %v1378_v45, %v1284_v42  ;;  %v1287_v59 = vmax.f32 %v997_v2, %v1223_v24 }
 0x209   :  { %v1289_v13 = vmax.f32 %v1158_v11, %v1225_v7  ;;  %v1486_v10 = vadd.f32 %v1485_v51, %v1439_v6  ;;  %v1528_v36 = vadd.f32 %v1527_v26, %v1441_v48  ;;  %v1001_v31 = vadd.f32 %v1000_v23, %v793_v4 }
 0x20a   :  { %v1162_v19 = vadd.f32 %v1161_v5, %v793_v4  ;;  %v1443_v15 = vmul.f32 %v1378_v45, %v1283_v57  ;;  %v1445_v33 = vmul.f32 %v1378_v45, %v1285_v58  ;;  %v1446_v35 = vmul.f32 %v1383_v9, %v1286_v16 }
 0x20b   :  { %v1448_v39 = vmul.f32 %v1383_v9, %v1288_v12  ;;  %v1226_v3 = vmul.f32 0.2, %v1001_v31  ;;  %v1003_v30 = vadd.f32 %v1002_v56, %v793_v4  ;;  %v1164_v47 = vadd.f32 %v1163_v8, %v793_v4 }
 0x20c   :  { %v1228_v27 = vmul.f32 0.2, %v1162_v19  ;;  %v1466_v37 = vadd.f32 %v1465_v62, %v1442_v25  ;;  %v1508_v46 = vadd.f32 %v1507_v22, %v1444_v21  ;;  %v1447_v20 = vmul.f32 %v1383_v9, %v1287_v59 }
 0x20d   :  { %v1449_v0 = vmul.f32 %v1383_v9, %v1289_v13  ;;  %v1290_v55 = vmax.f32 %v1001_v31, %v1226_v3  ;;  %v1227_v63 = vmul.f32 0.2, %v1003_v30  ;;  %v1229_v61 = vmul.f32 0.2, %v1164_v47 }
 0x20e   :  { %v1292_v38 = vmax.f32 %v1162_v19, %v1228_v27  ;;  %v1487_v32 = vadd.f32 %v1486_v10, %v1443_v15  ;;  %v1529_v34 = vadd.f32 %v1528_v36, %v1445_v33  ;;  %v1467_v60 = vadd.f32 %v1466_v37, %v1446_v35 }
 0x20f   :  { %v1509_v17 = vadd.f32 %v1508_v46, %v1448_v39  ;;  %v1450_v52 = vmul.f32 %v1388_v50, %v1290_v55  ;;  %v1291_v49 = vmax.f32 %v1003_v30, %v1227_v63  ;;  %v1293_v53 = vmax.f32 %v1164_v47, %v1229_v61 }
 0x210   :  { %v1452_v43 = vmul.f32 %v1388_v50, %v1292_v38  ;;  %v1488_v40 = vadd.f32 %v1487_v32, %v1447_v20  ;;  %v1530_v54 = vadd.f32 %v1529_v34, %v1449_v0  ;;  %v1648_v6 = vmov 1966171168  }
 0x211   :  { %v1468_v4 = vadd.f32 %v1467_v60, %v1450_v52  ;;  %v1451_v44 = vmul.f32 %v1388_v50, %v1291_v49  ;;  %v1453_v42 = vmul.f32 %v1388_v50, %v1293_v53  ;;  %v1545_v48 = vunpack.c.l.s4 %v1648_v6 }
 0x212   :  { %v1510_v41 = vadd.f32 %v1509_v17, %v1452_v43  ;;  %v2437_v39 = vlaneseq }
 0x213   :  { %v1469_v29 = vrot.slane %v1468_v4, 4  ;;  %v1489_v1 = vadd.f32 %v1488_v40, %v1451_v44  ;;  %v1531_v18 = vadd.f32 %v1530_v54, %v1453_v42  ;;  %v1546_v26 = vunpack.c.0.s8 %v1545_v48 }
 0x214   :  { %v1511_v14 = vrot.slane %v1510_v41, 4  ;;  %vm1569_vm1 = vcmp.lt.s32.totalorder %v2437_v39, 512 }
 0x215   :  { %v1470_v2 = vadd.f32 %v1469_v29, %v1468_v4  ;;  %v1490_v23 = vrot.slane %v1489_v1, 4  ;;  %v1532_v5 = vrot.slane %v1531_v18, 4  ;;  %v1549_v56 = vsub.s32 %v1546_v26, %v1776_v28 }
 0x216   :  { %v1512_v11 = vadd.f32 %v1511_v14, %v1510_v41 }
 0x217   :  { %v1471_v57 = vrot.slane %v1470_v2, 2  ;;  %v1491_v16 = vadd.f32 %v1490_v23, %v1489_v1  ;;  %v1533_v12 = vadd.f32 %v1532_v5, %v1531_v18 }
 0x218   :  { %v1513_v58 = vrot.slane %v1512_v11, 2 }
 0x219   :  { %v1472_v24 = vadd.f32 %v1471_v57, %v1470_v2  ;;  %v1492_v45 = vrot.slane %v1491_v16, 2  ;;  %v1534_v51 = vrot.slane %v1533_v12, 2 }
 0x21a   :  { %v1514_v7 = vadd.f32 %v1513_v58, %v1512_v11 }
 0x21b   :  { %v1473_v62 = vrot.slane %v1472_v24, 1  ;;  %v1493_v25 = vadd.f32 %v1492_v45, %v1491_v16  ;;  %v1535_v21 = vadd.f32 %v1534_v51, %v1533_v12 }
 0x21c   :  { %v1515_v22 = vrot.slane %v1514_v7, 1 }
 0x21d   :  { %v1494_v59 = vrot.slane %v1493_v25, 1  ;;  %v1536_v13 = vrot.slane %v1535_v21, 1  ;;  %v1474_v8 = vadd.f32 %v1473_v62, %v1472_v24 }
 0x21e   :  { %v1516_v9 = vadd.f32 %v1515_v22, %v1514_v7 }
 0x21f   :  { %v1495_v10 = vadd.f32 %v1494_v59, %v1493_v25  ;;  %v1537_v36 = vadd.f32 %v1536_v13, %v1535_v21 }
 0x221   :  { %v1542_v31 = vcombine.low %v1474_v8, %v1495_v10  ;;  %v1543_v19 = vcombine.low %v1516_v9, %v1537_v36 }
 0x223   :  { %v1550_v15 = vrot.slane %v1542_v31, %v1549_v56  ;;  %v1557_v33 = vrot.slane %v1543_v19, %v1549_v56 }
 0x225   :  { %v1558_v35 = vcombine.low %v1550_v15, %v1557_v33 }
 0x227   :  { %v1565_v3 = vrot.slane %v1558_v35, %v1549_v56 }
 0x229   :  { %1571 = vst.msk [vmem:[%s2432_s6] sm:$0xf] %vm1569_vm1, %v1565_v3 }

// kernel: pixel_discriminator.2
= control target key start
LH: loop header
LB: loop body
LE: loop exit
PB: predicated region body
PF: predicated region fallthrough
CT: control target
= control target key end

     0   :  { %v1066_v0 = vmov 2   ;;  %v1067_v1 = vmov 1   ;;  %v1068_v4 = vmov 3   ;;  %v1069_v5 = vmov 0   ;;  %s1731_s1 = inlined_call_operand.vmem [shape: f32[64,4], index: 1, kind: input, shape index: {}]   ;;  %s1732_s2 = inlined_call_operand.vmem [shape: f32[64,1], index: 2, kind: input, shape index: {}]   ;;  %s1733_s0 = inlined_call_operand.vmem [shape: f32[4,512], index: 0, kind: input, shape index: {}]   ;;  %s1734_s3 = inlined_call_operand.vmem [shape: f32[1,64,1], index: 3, kind: output, shape index: {0}]   ;;  %s1735_s4 = inlined_call_operand.vmem [shape: f32[1,64,64], index: 4, kind: output, shape index: {1}]  }
   0x1   :  { %1041 = vset.pattern.permute.xlu0 %v1066_v0  ;;  %1039 = vset.pattern.permute.xlu1 %v1067_v1  ;;  %v69_v2 = vld [vmem:[%s1731_s1 + $0x38] sm:$0xff]  ;;  %v68_v3 = vld [vmem:[%s1731_s1 + $0x30] sm:$0xff]  ;;  %v67_v7 = vld [vmem:[%s1731_s1 + $0x28] sm:$0xff]  ;;  %v120_v20 = vlaneseq  ;;  %vm42_vm0 = vcmask 7168   ;;  %vm51_vm1 = vcmask 523264  }
   0x2   :  { %421 = vperm.xlu0 %1041, %v69_v2   ;;  %289 = vperm.xlu1 %1039, %v69_v2   ;;  %v76_v6 = vld [vmem:[%s1732_s2 + $0x30] sm:$0xff]  ;;  %v65_v8 = vld [vmem:[%s1731_s1 + $0x18] sm:$0xff]  ;;  %v75_v10 = vld [vmem:[%s1732_s2 + $0x28] sm:$0xff] }
   0x3   :  { %v77_v9 = vld [vmem:[%s1732_s2 + $0x38] sm:$0xff]  ;;  %v66_v11 = vld [vmem:[%s1731_s1 + $0x20] sm:$0xff]  ;;  %v64_v14 = vld [vmem:[%s1731_s1 + $0x10] sm:$0xff]  ;;  %v121_v23 = vshrl.u32 %v120_v20, 7 }
   0x4   :  { %v74_v12 = vld [vmem:[%s1732_s2 + $0x20] sm:$0xff]  ;;  %v73_v13 = vld [vmem:[%s1732_s2 + $0x18] sm:$0xff]  ;;  %v72_v15 = vld [vmem:[%s1732_s2 + $0x10] sm:$0xff] }
   0x5   :  { %v71_v16 = vld [vmem:[%s1732_s2 + $0x8] sm:$0xff]  ;;  %v62_v17 = vld [vmem:[%s1731_s1] sm:$0xff]  ;;  %v294_v24 = vsub.s32 1, %v121_v23  ;;  %v298_v25 = vsub.s32 5, %v121_v23  ;;  %v426_v30 = vsub.s32 2, %v121_v23  ;;  %v430_v31 = vsub.s32 6, %v121_v23 }
   0x6   :  { %1043 = vset.pattern.permute.xlu0 %v1068_v4  ;;  %1040 = vset.pattern.permute.xlu1 %v1069_v5  ;;  %v70_v18 = vld [vmem:[%s1732_s2] sm:$0xff]  ;;  %v63_v19 = vld [vmem:[%s1731_s1 + $0x8] sm:$0xff]  ;;  %v122_v32 = vsub.s32 0, %v121_v23  ;;  %v126_v33 = vsub.s32 4, %v121_v23  ;;  %v558_v34 = vsub.s32 3, %v121_v23  ;;  %v562_v35 = vsub.s32 7, %v121_v23 }
   0x7   :  { %553 = vperm.xlu0 %1043, %v69_v2   ;;  %110 = vperm.xlu1 %1040, %v68_v3   ;;  %v60_v28 = vld [vmem:[%s1733_s0] sm:$0xff]  ;;  %v61_v29 = vld [vmem:[%s1733_s0 + $0x8] sm:$0xff] }
   0x8   :  { %v295_v36 = vrot.slane %v60_v28, %v294_v24  ;;  %v299_v37 = vrot.slane %v60_v28, %v298_v25  ;;  %v303_v38 = vrot.slane %v61_v29, %v294_v24  ;;  %v307_v41 = vrot.slane %v61_v29, %v298_v25 }
   0x9   :  { %v427_v42 = vrot.slane %v60_v28, %v426_v30  ;;  %v431_v43 = vrot.slane %v60_v28, %v430_v31  ;;  %v435_v44 = vrot.slane %v61_v29, %v426_v30  ;;  %v439_v45 = vrot.slane %v61_v29, %v430_v31 }
   0xa   :  { %v123_v46 = vrot.slane %v60_v28, %v122_v32  ;;  %v127_v47 = vrot.slane %v60_v28, %v126_v33  ;;  %v131_v48 = vrot.slane %v61_v29, %v122_v32  ;;  %v135_v49 = vrot.slane %v61_v29, %v126_v33 }
   0xb   :  { %220 = vperm.xlu1 %1040, %v76_v6   ;;  %545 = vperm.xlu0 %1043, %v67_v7   ;;  %v559_v50 = vrot.slane %v60_v28, %v558_v34  ;;  %v563_v51 = vrot.slane %v60_v28, %v562_v35  ;;  %v567_v52 = vrot.slane %v61_v29, %v558_v34 }
   0xc   :  { %v1182_v53 = vrot.slane %v295_v36, %v294_v24  ;;  %v1184_v54 = vrot.slane %v299_v37, %v294_v24  ;;  %v1186_v55 = vrot.slane %v303_v38, %v294_v24  ;;  %v571_v56 = vrot.slane %v61_v29, %v562_v35 }
   0xd   :  { %v1190_v58 = vrot.slane %v307_v41, %v294_v24  ;;  %v1192_v59 = vrot.slane %v427_v42, %v426_v30  ;;  %v1194_v60 = vrot.slane %v431_v43, %v426_v30  ;;  %v1196_v61 = vrot.slane %v435_v44, %v426_v30 }
   0xe   :  { %v1198_v63 = vrot.slane %v439_v45, %v426_v30  ;;  %v1212_v6 = vrot.slane %v567_v52, %v558_v34 }
   0xf   :  { %1042 = vset.pattern.permute.xlu1 %v1067_v1  ;;  %537 = vperm.xlu0 %1043, %v65_v8  }
  0x10   :  { %285 = vperm.xlu1 %1042, %v68_v3  }
  0x13   :  { %1056 = vset.pattern.permute.xlu0 %v1069_v5 }
  0x14   :  { %1044 = vset.pattern.permute.xlu1 %v1069_v5  ;;  %115 = vperm.xlu0 %1056, %v69_v2   ;;  %v1204_v2 = vrot.slane %v131_v48, %v122_v32 }
  0x15   :  { %105 = vperm.xlu1 %1044, %v67_v7  }
  0x18   :  { %225 = vperm.xlu0 %1056, %v77_v9  }
  0x19   :  { %1045 = vset.pattern.permute.xlu1 %v1066_v0 }
  0x1a   :  { %417 = vperm.xlu1 %1045, %v68_v3  }
  0x1c   :  { %215 = vperm.xlu0 %1056, %v75_v10   ;;  %v1217_v10 = vrot.slane %v571_v56, %v558_v34 }
  0x1e   :  { %1046 = vset.pattern.permute.xlu1 %v1067_v1 }
  0x1f   :  { %281 = vperm.xlu1 %1046, %v67_v7  }
  0x20   :  { %100 = vperm.xlu0 %1056, %v66_v11  }
  0x23   :  { %1047 = vset.pattern.permute.xlu1 %v1068_v4 }
  0x24   :  { %549 = vperm.xlu1 %1047, %v68_v3   ;;  %210 = vperm.xlu0 %1056, %v74_v12   ;;  %v1206_v3 = vrot.slane %v135_v49, %v122_v32 }
  0x28   :  { %1048 = vset.pattern.permute.xlu1 %v1066_v0  ;;  %205 = vperm.xlu0 %1056, %v73_v13  }
  0x29   :  { %413 = vperm.xlu1 %1048, %v67_v7  }
  0x2c   :  { %90 = vperm.xlu0 %1056, %v64_v14  }
  0x2d   :  { %1049 = vset.pattern.permute.xlu1 %v1067_v1 }
  0x2e   :  { %277 = vperm.xlu1 %1049, %v66_v11  }
  0x30   :  { %200 = vperm.xlu0 %1056, %v72_v15  }
  0x32   :  { %1050 = vset.pattern.permute.xlu1 %v1069_v5 }
  0x33   :  { %95 = vperm.xlu1 %1050, %v65_v8  }
  0x34   :  { %195 = vperm.xlu0 %1056, %v71_v16  }
  0x37   :  { %1051 = vset.pattern.permute.xlu1 %v1066_v0 }
  0x38   :  { %409 = vperm.xlu1 %1051, %v66_v11   ;;  %80 = vperm.xlu0 %1056, %v62_v17  }
  0x3c   :  { %1052 = vset.pattern.permute.xlu1 %v1067_v1  ;;  %190 = vperm.xlu0 %1056, %v70_v18  }
  0x3d   :  { %273 = vperm.xlu1 %1052, %v65_v8  }
  0x40   :  { %1063 = vset.pattern.permute.xlu0 %v1068_v4 }
  0x41   :  { %1053 = vset.pattern.permute.xlu1 %v1068_v4  ;;  %529 = vperm.xlu0 %1063, %v63_v19  }
  0x42   :  { %541 = vperm.xlu1 %1053, %v66_v11  }
  0x46   :  { %1054 = vset.pattern.permute.xlu1 %v1066_v0 }
  0x47   :  { %405 = vperm.xlu1 %1054, %v65_v8  }
  0x4b   :  { %1055 = vset.pattern.permute.xlu1 %v1067_v1 }
  0x4c   :  { %269 = vperm.xlu1 %1055, %v64_v14  }
  0x50   :  { %1057 = vset.pattern.permute.xlu1 %v1069_v5  ;;  %v1210_v5 = vrot.slane %v563_v51, %v558_v34 }
  0x51   :  { %85 = vperm.xlu1 %1057, %v63_v19  }
  0x55   :  { %1058 = vset.pattern.permute.xlu1 %v1066_v0 }
  0x56   :  { %401 = vperm.xlu1 %1058, %v64_v14  }
  0x5a   :  { %1059 = vset.pattern.permute.xlu1 %v1067_v1 }
  0x5b   :  { %265 = vperm.xlu1 %1059, %v63_v19  }
  0x5f   :  { %1060 = vset.pattern.permute.xlu1 %v1068_v4 }
  0x60   :  { %533 = vperm.xlu1 %1060, %v64_v14  }
  0x64   :  { %1061 = vset.pattern.permute.xlu1 %v1066_v0 }
  0x65   :  { %397 = vperm.xlu1 %1061, %v63_v19  }
  0x69   :  { %1062 = vset.pattern.permute.xlu1 %v1067_v1  ;;  %v1202_v1 = vrot.slane %v127_v47, %v122_v32 }
  0x6a   :  { %261 = vperm.xlu1 %1062, %v62_v17  }
  0x6e   :  { %1064 = vset.pattern.permute.xlu1 %v1066_v0  ;;  %v1200_v0 = vrot.slane %v123_v46, %v122_v32 }
  0x6f   :  { %393 = vperm.xlu1 %1064, %v62_v17  }
  0x73   :  { %1065 = vset.pattern.permute.xlu1 %v1068_v4  ;;  %v1208_v4 = vrot.slane %v559_v50, %v558_v34 }
  0x74   :  { %525 = vperm.xlu1 %1065, %v62_v17  }
  0x7d   :  { %v290_v21 = vpop.permute.xlu1 %289  ;;  %v1166_v22 = vpop.permute.xlu0 %421 }
  0x7e   :  { %v356_v7 = vmul.f32 %v1182_v53, %v290_v21  ;;  %v357_v8 = vmul.f32 %v1184_v54, %v290_v21  ;;  %v358_v9 = vmul.f32 %v1186_v55, %v290_v21  ;;  %v359_v11 = vmul.f32 %v1190_v58, %v290_v21 }
  0x7f   :  { %v488_v12 = vmul.f32 %v1192_v59, %v1166_v22  ;;  %v489_v13 = vmul.f32 %v1194_v60, %v1166_v22  ;;  %v490_v14 = vmul.f32 %v1196_v61, %v1166_v22  ;;  %v491_v21 = vmul.f32 %v1198_v63, %v1166_v22 }
  0x82   :  { %v1168_v26 = vpop.permute.xlu1 %110  ;;  %v1170_v27 = vpop.permute.xlu0 %553 }
  0x83   :  { %v180_v23 = vmul.f32 %v1200_v0, %v1168_v26  ;;  %v181_v24 = vmul.f32 %v1202_v1, %v1168_v26  ;;  %v182_v25 = vmul.f32 %v1204_v2, %v1168_v26  ;;  %v183_v28 = vmul.f32 %v1206_v3, %v1168_v26 }
  0x84   :  { %v620_v29 = vmul.f32 %v1208_v4, %v1170_v27  ;;  %v621_v30 = vmul.f32 %v1210_v5, %v1170_v27  ;;  %v622_v22 = vmul.f32 %v1212_v6, %v1170_v27  ;;  %v623_v50 = vmul.f32 %v1217_v10, %v1170_v27 }
  0x86   :  { %v1178_v39 = vpop.permute.xlu1 %220  ;;  %v1180_v40 = vpop.permute.xlu0 %545 }
  0x87   :  { %v252_v41 = vadd.f32 %v1178_v39, %v180_v23  ;;  %v253_v42 = vadd.f32 %v1178_v39, %v181_v24  ;;  %v254_v43 = vadd.f32 %v1178_v39, %v182_v25  ;;  %v255_v44 = vadd.f32 %v1178_v39, %v183_v28 }
  0x88   :  { %v1258_v51 = vmul.f32 %v1208_v4, %v1180_v40  ;;  %v1262_v52 = vmul.f32 %v1210_v5, %v1180_v40 }
  0x8a   :  { %v1188_v57 = vpop.permute.xlu0 %537 }
  0x8b   :  { %v286_v62 = vpop.permute.xlu1 %285 }
  0x8c   :  { %v352_v31 = vmul.f32 %v1182_v53, %v286_v62  ;;  %v353_v32 = vmul.f32 %v1184_v54, %v286_v62  ;;  %v354_v33 = vmul.f32 %v1186_v55, %v286_v62  ;;  %v355_v34 = vmul.f32 %v1190_v58, %v286_v62 }
  0x8e   :  { %v384_v56 = vadd.f32 %v352_v31, %v252_v41  ;;  %v385_v62 = vadd.f32 %v353_v32, %v253_v42  ;;  %v387_v39 = vadd.f32 %v355_v34, %v255_v44 }
  0x8f   :  { %v116_v15 = vpop.permute.xlu0 %115 }
  0x90   :  { %v184_v16 = vmul.f32 %v1200_v0, %v116_v15  ;;  %v185_v17 = vmul.f32 %v1202_v1, %v116_v15  ;;  %v186_v18 = vmul.f32 %v1204_v2, %v116_v15  ;;  %v187_v19 = vmul.f32 %v1206_v3, %v116_v15  ;;  %v106_v20 = vpop.permute.xlu1 %105 }
  0x91   :  { %v386_v15 = vadd.f32 %v354_v33, %v254_v43  ;;  %v179_v25 = vmul.f32 %v1206_v3, %v106_v20 }
  0x93   :  { %v226_v35 = vpop.permute.xlu0 %225 }
  0x94   :  { %v256_v36 = vadd.f32 %v226_v35, %v184_v16  ;;  %v257_v26 = vadd.f32 %v226_v35, %v185_v17  ;;  %v258_v37 = vadd.f32 %v226_v35, %v186_v18  ;;  %v259_v38 = vadd.f32 %v226_v35, %v187_v19 }
  0x95   :  { %v418_v45 = vpop.permute.xlu1 %417 }
  0x96   :  { %v388_v46 = vadd.f32 %v356_v7, %v256_v36  ;;  %v389_v47 = vadd.f32 %v357_v8, %v257_v26  ;;  %v390_v48 = vadd.f32 %v358_v9, %v258_v37  ;;  %v391_v49 = vadd.f32 %v359_v11, %v259_v38 }
  0x97   :  { %v176_v7 = vmul.f32 %v1200_v0, %v106_v20  ;;  %v216_v8 = vpop.permute.xlu0 %215  ;;  %v177_v9 = vmul.f32 %v1202_v1, %v106_v20  ;;  %v178_v11 = vmul.f32 %v1204_v2, %v106_v20  ;;  %v484_v27 = vmul.f32 %v1192_v59, %v418_v45 }
  0x98   :  { %v485_v16 = vmul.f32 %v1194_v60, %v418_v45  ;;  %v521_v18 = vadd.f32 %v489_v13, %v389_v47  ;;  %v523_v19 = vadd.f32 %v491_v21, %v391_v49  ;;  %v520_v23 = vadd.f32 %v488_v12, %v388_v46 }
  0x99   :  { %v522_v24 = vadd.f32 %v490_v14, %v390_v48  ;;  %v486_v28 = vmul.f32 %v1196_v61, %v418_v45  ;;  %v487_v31 = vmul.f32 %v1198_v63, %v418_v45  ;;  %v248_v32 = vadd.f32 %v216_v8, %v176_v7 }
  0x9a   :  { %v282_v17 = vpop.permute.xlu1 %281  ;;  %v653_v33 = vadd.f32 %v621_v30, %v521_v18  ;;  %v655_v34 = vadd.f32 %v623_v50, %v523_v19  ;;  %v652_v35 = vadd.f32 %v620_v29, %v520_v23  ;;  %v516_v26 = vadd.f32 %v484_v27, %v384_v56 }
  0x9b   :  { %v654_v36 = vadd.f32 %v622_v22, %v522_v24  ;;  %v517_v37 = vadd.f32 %v485_v16, %v385_v62  ;;  %v249_v38 = vadd.f32 %v216_v8, %v177_v9  ;;  %v250_v41 = vadd.f32 %v216_v8, %v178_v11 }
  0x9c   :  { %v348_v13 = vmul.f32 %v1182_v53, %v282_v17  ;;  %v685_v21 = vmul.f32 0.2, %v653_v33  ;;  %v687_v12 = vmul.f32 0.2, %v655_v34  ;;  %v684_v14 = vmul.f32 0.2, %v652_v35 }
  0x9d   :  { %v519_v42 = vadd.f32 %v487_v31, %v387_v39  ;;  %v349_v20 = vmul.f32 %v1184_v54, %v282_v17  ;;  %v351_v43 = vmul.f32 %v1190_v58, %v282_v17  ;;  %v686_v45 = vmul.f32 0.2, %v654_v36  ;;  %v101_v31 = vpop.permute.xlu0 %100 }
  0x9e   :  { %v1279_v47 = vmax.f32 %v653_v33, %v685_v21  ;;  %v1281_v48 = vmax.f32 %v655_v34, %v687_v12  ;;  %v1283_v49 = vmax.f32 %v652_v35, %v684_v14  ;;  %v518_v56 = vadd.f32 %v486_v28, %v386_v15 }
  0x9f   :  { %v550_v44 = vpop.permute.xlu1 %549  ;;  %v1285_v50 = vmax.f32 %v654_v36, %v686_v45  ;;  %v251_v62 = vadd.f32 %v216_v8, %v179_v25  ;;  %v350_v39 = vmul.f32 %v1186_v55, %v282_v17  ;;  %v380_v7 = vadd.f32 %v348_v13, %v248_v32 }
  0xa0   :  { %v616_v30 = vmul.f32 %v1208_v4, %v550_v44  ;;  %v617_v29 = vmul.f32 %v1210_v5, %v550_v44  ;;  %v618_v22 = vmul.f32 %v1212_v6, %v550_v44  ;;  %v619_v46 = vmul.f32 %v1217_v10, %v550_v44  ;;  %1760 = vst [vmem:[#allocation2_spill] sm:$0xff] %v1279_v47 }
  0xa1   :  { %1761 = vst [vmem:[#allocation3_spill] sm:$0xff] %v1281_v48  ;;  %1762 = vst [vmem:[#allocation4_spill] sm:$0xff] %v1283_v49  ;;  %809 = vmatprep.subr.mxu0 %v1279_v47  ;;  %914 = vmatprep.subr.mxu1 %v1281_v48  ;;  %v381_v16 = vadd.f32 %v349_v20, %v249_v38  ;;  %v383_v18 = vadd.f32 %v351_v43, %v251_v62  ;;  %v1736_v25 = vmov 0.0   ;;  %v211_v45 = vpop.permute.xlu0 %210 }
  0xa2   :  { %1763 = vst [vmem:[#allocation5_spill] sm:$0xff] %v1285_v50  ;;  %v649_v9 = vadd.f32 %v617_v29, %v517_v37  ;;  %v651_v11 = vadd.f32 %v619_v46, %v519_v42  ;;  %v648_v27 = vadd.f32 %v616_v30, %v516_v26  ;;  %810 = vmatpush1.xpose.msra.mxu0 %v1283_v49  ;;  %44 = vst.msk [vmem:[%s1734_s3 + $0x8] sm:$0xff] %vm42_vm0, %v1736_v25 }
  0xa3   :  { %915 = vmatpush1.xpose.msra.mxu1 %v1285_v50  ;;  %v650_v15 = vadd.f32 %v618_v22, %v518_v56  ;;  %43 = vst.msk [vmem:[%s1734_s3] sm:$0xff] %vm42_vm0, %v1736_v25  ;;  %45 = vst.msk [vmem:[%s1734_s3 + $0x10] sm:$0xff] %vm42_vm0, %v1736_v25  ;;  %v615_v28 = vmul.f32 %v1217_v10, %v1180_v40  ;;  %v382_v35 = vadd.f32 %v350_v39, %v250_v41 }
  0xa4   :  { %v414_v19 = vpop.permute.xlu1 %413  ;;  %46 = vst.msk [vmem:[%s1734_s3 + $0x18] sm:$0xff] %vm42_vm0, %v1736_v25  ;;  %47 = vst.msk [vmem:[%s1734_s3 + $0x20] sm:$0xff] %vm42_vm0, %v1736_v25  ;;  %v681_v32 = vmul.f32 0.2, %v649_v9  ;;  %v683_v33 = vmul.f32 0.2, %v651_v11  ;;  %v614_v14 = vmul.f32 %v1212_v6, %v1180_v40 }
  0xa5   :  { %v480_v8 = vmul.f32 %v1192_v59, %v414_v19  ;;  %v481_v17 = vmul.f32 %v1194_v60, %v414_v19  ;;  %v482_v23 = vmul.f32 %v1196_v61, %v414_v19  ;;  %v483_v24 = vmul.f32 %v1198_v63, %v414_v19  ;;  %48 = vst.msk [vmem:[%s1734_s3 + $0x28] sm:$0xff] %vm42_vm0, %v1736_v25 }
  0xa6   :  { %49 = vst.msk [vmem:[%s1734_s3 + $0x30] sm:$0xff] %vm42_vm0, %v1736_v25  ;;  %50 = vst.msk [vmem:[%s1734_s3 + $0x38] sm:$0xff] %vm42_vm0, %v1736_v25  ;;  %v680_v34 = vmul.f32 0.2, %v648_v27  ;;  %v1338_v38 = vmax.f32 %v649_v9, %v681_v32  ;;  %v1340_v13 = vmax.f32 %v651_v11, %v683_v33  ;;  %v682_v12 = vmul.f32 0.2, %v650_v15 }
  0xa7   :  { %v512_v36 = vadd.f32 %v480_v8, %v380_v7  ;;  %v513_v26 = vadd.f32 %v481_v17, %v381_v16  ;;  %v515_v37 = vadd.f32 %v483_v24, %v383_v18  ;;  %v514_v42 = vadd.f32 %v482_v23, %v382_v35  ;;  %v206_v16 = vpop.permute.xlu0 %205 }
  0xa8   :  { %v1342_v21 = vmax.f32 %v648_v27, %v680_v34  ;;  %811 = vmatprep.subr.mxu0 %v1338_v38  ;;  %916 = vmatprep.subr.mxu1 %v1340_v13  ;;  %v1349_v41 = vmax.f32 %v650_v15, %v682_v12  ;;  %v173_v11 = vmul.f32 %v1202_v1, %v101_v31 }
  0xa9   :  { %v278_v20 = vpop.permute.xlu1 %277  ;;  %v645_v43 = vadd.f32 %v1262_v52, %v513_v26  ;;  %v647_v44 = vadd.f32 %v615_v28, %v515_v37  ;;  %v644_v30 = vadd.f32 %v1258_v51, %v512_v36  ;;  %v646_v22 = vadd.f32 %v614_v14, %v514_v42 }
  0xaa   :  { %812 = vmatpush1.xpose.msra.mxu0 %v1342_v21  ;;  %917 = vmatpush1.xpose.msra.mxu1 %v1349_v41  ;;  %v172_v52 = vmul.f32 %v1200_v0, %v101_v31  ;;  %v174_v51 = vmul.f32 %v1204_v2, %v101_v31  ;;  %v175_v27 = vmul.f32 %v1206_v3, %v101_v31 }
  0xab   :  { %v677_v29 = vmul.f32 0.2, %v645_v43  ;;  %v679_v40 = vmul.f32 0.2, %v647_v44  ;;  %v676_v56 = vmul.f32 0.2, %v644_v30  ;;  %v245_v8 = vadd.f32 %v211_v45, %v173_v11  ;;  %v1374_v33 = vpop.permute.xlu0 %90 }
  0xac   :  { %v678_v9 = vmul.f32 0.2, %v646_v22  ;;  %v244_v15 = vadd.f32 %v211_v45, %v172_v52  ;;  %v246_v17 = vadd.f32 %v211_v45, %v174_v51  ;;  %v247_v23 = vadd.f32 %v211_v45, %v175_v27 }
  0xad   :  { %v1354_v62 = vmax.f32 %v645_v43, %v677_v29  ;;  %v1356_v39 = vmax.f32 %v647_v44, %v679_v40  ;;  %v1358_v7 = vmax.f32 %v644_v30, %v676_v56  ;;  %v344_v24 = vmul.f32 %v1182_v53, %v278_v20 }
  0xae   :  { %v96_v46 = vpop.permute.xlu1 %95  ;;  %v1366_v18 = vmax.f32 %v646_v22, %v678_v9  ;;  %v345_v28 = vmul.f32 %v1184_v54, %v278_v20  ;;  %v346_v31 = vmul.f32 %v1186_v55, %v278_v20  ;;  %v347_v32 = vmul.f32 %v1190_v58, %v278_v20 }
  0xaf   :  { %1764 = vst [vmem:[#allocation6_spill] sm:$0xff] %v1354_v62  ;;  %1765 = vst [vmem:[#allocation7_spill] sm:$0xff] %v1356_v39  ;;  %813 = vmatprep.subr.mxu0 %v1354_v62  ;;  %918 = vmatprep.subr.mxu1 %v1356_v39  ;;  %v604_v12 = vmul.f32 %v1208_v4, %v1188_v57  ;;  %v605_v14 = vmul.f32 %v1210_v5, %v1188_v57 }
  0xb0   :  { %1766 = vst [vmem:[#allocation8_spill] sm:$0xff] %v1358_v7  ;;  %1767 = vst [vmem:[#allocation9_spill] sm:$0xff] %v1366_v18  ;;  %814 = vmatpush1.xpose.msra.mxu0 %v1358_v7  ;;  %919 = vmatpush1.xpose.msra.mxu1 %v1366_v18  ;;  %v606_v42 = vmul.f32 %v1212_v6, %v1188_v57  ;;  %v376_v20 = vadd.f32 %v344_v24, %v244_v15 }
  0xb1   :  { %v377_v43 = vadd.f32 %v345_v28, %v245_v8  ;;  %v378_v44 = vadd.f32 %v346_v31, %v246_v17  ;;  %v379_v45 = vadd.f32 %v347_v32, %v247_v23  ;;  %v168_v30 = vmul.f32 %v1200_v0, %v96_v46  ;;  %v1394_v17 = vpop.permute.xlu0 %200 }
  0xb2   :  { %v169_v29 = vmul.f32 %v1202_v1, %v96_v46  ;;  %v170_v40 = vmul.f32 %v1204_v2, %v96_v46  ;;  %v171_v22 = vmul.f32 %v1206_v3, %v96_v46 }
  0xb3   :  { %v410_v19 = vpop.permute.xlu1 %409  ;;  %v240_v31 = vadd.f32 %v206_v16, %v168_v30 }
  0xb4   :  { %v476_v34 = vmul.f32 %v1192_v59, %v410_v19  ;;  %v477_v35 = vmul.f32 %v1194_v60, %v410_v19  ;;  %v478_v36 = vmul.f32 %v1196_v61, %v410_v19  ;;  %v479_v26 = vmul.f32 %v1198_v63, %v410_v19 }
  0xb5   :  { %v241_v32 = vadd.f32 %v206_v16, %v169_v29 }
  0xb6   :  { %v508_v56 = vadd.f32 %v476_v34, %v376_v20  ;;  %v509_v9 = vadd.f32 %v477_v35, %v377_v43  ;;  %v510_v52 = vadd.f32 %v478_v36, %v378_v44  ;;  %v511_v11 = vadd.f32 %v479_v26, %v379_v45 }
  0xb7   :  { %v242_v34 = vadd.f32 %v206_v16, %v170_v40  ;;  %v243_v35 = vadd.f32 %v206_v16, %v171_v22  ;;  %v1406_v22 = vpop.permute.xlu0 %195 }
  0xb8   :  { %v274_v37 = vpop.permute.xlu1 %273 }
  0xb9   :  { %v340_v51 = vmul.f32 %v1182_v53, %v274_v37  ;;  %v341_v27 = vmul.f32 %v1184_v54, %v274_v37  ;;  %v342_v19 = vmul.f32 %v1186_v55, %v274_v37  ;;  %v343_v15 = vmul.f32 %v1190_v58, %v274_v37 }
  0xba   :  { %v607_v37 = vmul.f32 %v1217_v10, %v1188_v57 }
  0xbb   :  { %v372_v44 = vadd.f32 %v340_v51, %v240_v31  ;;  %v373_v45 = vadd.f32 %v341_v27, %v241_v32  ;;  %v374_v25 = vadd.f32 %v342_v19, %v242_v34  ;;  %v375_v48 = vadd.f32 %v343_v15, %v243_v35 }
  0xbc   :  { %v165_v35 = vmul.f32 %v1202_v1, %v1374_v33 }
  0xbd   :  { %v542_v8 = vpop.permute.xlu1 %541 }
  0xbe   :  { %v608_v23 = vmul.f32 %v1208_v4, %v542_v8  ;;  %v609_v24 = vmul.f32 %v1210_v5, %v542_v8  ;;  %v610_v46 = vmul.f32 %v1212_v6, %v542_v8  ;;  %v611_v28 = vmul.f32 %v1217_v10, %v542_v8 }
  0xc0   :  { %v641_v36 = vadd.f32 %v609_v24, %v509_v9  ;;  %v643_v26 = vadd.f32 %v611_v28, %v511_v11  ;;  %v640_v20 = vadd.f32 %v608_v23, %v508_v56  ;;  %v642_v43 = vadd.f32 %v610_v46, %v510_v52 }
  0xc2   :  { %v406_v50 = vpop.permute.xlu1 %405  ;;  %v673_v39 = vmul.f32 0.2, %v641_v36  ;;  %v675_v47 = vmul.f32 0.2, %v643_v26  ;;  %v672_v49 = vmul.f32 0.2, %v640_v20 }
  0xc3   :  { %v472_v30 = vmul.f32 %v1192_v59, %v406_v50  ;;  %v473_v29 = vmul.f32 %v1194_v60, %v406_v50  ;;  %v474_v16 = vmul.f32 %v1196_v61, %v406_v50  ;;  %v475_v40 = vmul.f32 %v1198_v63, %v406_v50 }
  0xc4   :  { %v1408_v56 = vmax.f32 %v641_v36, %v673_v39  ;;  %v1410_v57 = vmax.f32 %v643_v26, %v675_v47  ;;  %v1412_v9 = vmax.f32 %v640_v20, %v672_v49  ;;  %v674_v52 = vmul.f32 0.2, %v642_v43 }
  0xc5   :  { %v504_v11 = vadd.f32 %v472_v30, %v372_v44  ;;  %v505_v51 = vadd.f32 %v473_v29, %v373_v45  ;;  %v506_v27 = vadd.f32 %v474_v16, %v374_v25  ;;  %v507_v19 = vadd.f32 %v475_v40, %v375_v48  ;;  %v1420_v25 = vpop.permute.xlu0 %80 }
  0xc6   :  { %815 = vmatprep.subr.mxu0 %v1408_v56  ;;  %920 = vmatprep.subr.mxu1 %v1410_v57  ;;  %v1416_v15 = vmax.f32 %v642_v43, %v674_v52  ;;  %v166_v36 = vmul.f32 %v1204_v2, %v1374_v33  ;;  %v167_v26 = vmul.f32 %v1206_v3, %v1374_v33 }
  0xc7   :  { %v270_v50 = vpop.permute.xlu1 %269  ;;  %816 = vmatpush1.xpose.msra.mxu0 %v1412_v9  ;;  %v637_v39 = vadd.f32 %v605_v14, %v505_v51  ;;  %v639_v8 = vadd.f32 %v607_v37, %v507_v19  ;;  %v636_v47 = vadd.f32 %v604_v12, %v504_v11  ;;  %v638_v23 = vadd.f32 %v606_v42, %v506_v27 }
  0xc8   :  { %921 = vmatpush1.xpose.msra.mxu1 %v1416_v15  ;;  %v164_v42 = vmul.f32 %v1200_v0, %v1374_v33  ;;  %v336_v43 = vmul.f32 %v1182_v53, %v270_v50  ;;  %v337_v37 = vmul.f32 %v1184_v54, %v270_v50  ;;  %v338_v44 = vmul.f32 %v1186_v55, %v270_v50 }
  0xc9   :  { %v669_v49 = vmul.f32 0.2, %v637_v39  ;;  %v671_v24 = vmul.f32 0.2, %v639_v8  ;;  %v668_v46 = vmul.f32 0.2, %v636_v47  ;;  %v1433_v14 = vpop.permute.xlu0 %190  ;;  %v339_v45 = vmul.f32 %v1190_v58, %v270_v50 }
  0xca   :  { %v670_v32 = vmul.f32 0.2, %v638_v23  ;;  %v236_v29 = vadd.f32 %v1394_v17, %v164_v42  ;;  %v237_v16 = vadd.f32 %v1394_v17, %v165_v35  ;;  %v238_v40 = vadd.f32 %v1394_v17, %v166_v36 }
  0xcb   :  { %v1422_v48 = vmax.f32 %v637_v39, %v669_v49  ;;  %v1424_v28 = vmax.f32 %v639_v8, %v671_v24  ;;  %v1426_v31 = vmax.f32 %v636_v47, %v668_v46  ;;  %v239_v52 = vadd.f32 %v1394_v17, %v167_v26 }
  0xcc   :  { %v86_v34 = vpop.permute.xlu1 %85  ;;  %v1431_v12 = vmax.f32 %v638_v23, %v670_v32  ;;  %v368_v47 = vadd.f32 %v336_v43, %v236_v29  ;;  %v369_v23 = vadd.f32 %v337_v37, %v237_v16  ;;  %v370_v49 = vadd.f32 %v338_v44, %v238_v40 }
  0xcd   :  { %1768 = vst [vmem:[#allocation10_spill] sm:$0xff] %v1422_v48  ;;  %1769 = vst [vmem:[#allocation11_spill] sm:$0xff] %v1424_v28  ;;  %817 = vmatprep.subr.mxu0 %v1422_v48  ;;  %922 = vmatprep.subr.mxu1 %v1424_v28  ;;  %v530_v30 = vpop.permute.xlu0 %529  ;;  %v371_v24 = vadd.f32 %v339_v45, %v239_v52  ;;  %v160_v17 = vmul.f32 %v1200_v0, %v86_v34 }
  0xce   :  { %818 = vmatpush1.xpose.msra.mxu0 %v1426_v31  ;;  %1770 = vst [vmem:[#allocation12_spill] sm:$0xff] %v1431_v12  ;;  %923 = vmatpush1.xpose.msra.mxu1 %v1431_v12  ;;  %v596_v50 = vmul.f32 %v1208_v4, %v530_v30  ;;  %v597_v39 = vmul.f32 %v1210_v5, %v530_v30 }
  0xcf   :  { %v598_v8 = vmul.f32 %v1212_v6, %v530_v30  ;;  %v161_v46 = vmul.f32 %v1202_v1, %v86_v34  ;;  %v162_v32 = vmul.f32 %v1204_v2, %v86_v34  ;;  %v163_v42 = vmul.f32 %v1206_v3, %v86_v34 }
  0xd0   :  { %v232_v40 = vadd.f32 %v1406_v22, %v160_v17  ;;  %v599_v62 = vmul.f32 %v1217_v10, %v530_v30 }
  0xd1   :  { %v402_v20 = vpop.permute.xlu1 %401  ;;  %v233_v52 = vadd.f32 %v1406_v22, %v161_v46 }
  0xd2   :  { %v468_v33 = vmul.f32 %v1192_v59, %v402_v20  ;;  %v469_v11 = vmul.f32 %v1194_v60, %v402_v20  ;;  %v470_v51 = vmul.f32 %v1196_v61, %v402_v20  ;;  %v471_v27 = vmul.f32 %v1198_v63, %v402_v20 }
  0xd4   :  { %v500_v35 = vadd.f32 %v468_v33, %v368_v47  ;;  %v501_v36 = vadd.f32 %v469_v11, %v369_v23  ;;  %v502_v26 = vadd.f32 %v470_v51, %v370_v49  ;;  %v503_v20 = vadd.f32 %v471_v27, %v371_v24 }
  0xd5   :  { %v234_v33 = vadd.f32 %v1406_v22, %v162_v32  ;;  %v235_v11 = vadd.f32 %v1406_v22, %v163_v42 }
  0xd6   :  { %v266_v19 = vpop.permute.xlu1 %265 }
  0xd7   :  { %v332_v18 = vmul.f32 %v1182_v53, %v266_v19  ;;  %v333_v28 = vmul.f32 %v1184_v54, %v266_v19  ;;  %v334_v43 = vmul.f32 %v1186_v55, %v266_v19  ;;  %v335_v37 = vmul.f32 %v1190_v58, %v266_v19 }
  0xd9   :  { %v364_v23 = vadd.f32 %v332_v18, %v232_v40  ;;  %v365_v49 = vadd.f32 %v333_v28, %v233_v52  ;;  %v366_v24 = vadd.f32 %v334_v43, %v234_v33  ;;  %v367_v7 = vadd.f32 %v335_v37, %v235_v11 }
  0xda   :  { %v157_v40 = vmul.f32 %v1202_v1, %v1420_v25  ;;  %v159_v52 = vmul.f32 %v1206_v3, %v1420_v25 }
  0xdb   :  { %v534_v44 = vpop.permute.xlu1 %533 }
  0xdc   :  { %v600_v45 = vmul.f32 %v1208_v4, %v534_v44  ;;  %v601_v29 = vmul.f32 %v1210_v5, %v534_v44  ;;  %v602_v16 = vmul.f32 %v1212_v6, %v534_v44  ;;  %v603_v34 = vmul.f32 %v1217_v10, %v534_v44 }
  0xde   :  { %v633_v51 = vadd.f32 %v601_v29, %v501_v36  ;;  %v635_v27 = vadd.f32 %v603_v34, %v503_v20  ;;  %v632_v19 = vadd.f32 %v600_v45, %v500_v35  ;;  %v634_v47 = vadd.f32 %v602_v16, %v502_v26 }
  0xdf   :  { %v156_v34 = vmul.f32 %v1200_v0, %v1420_v25 }
  0xe0   :  { %v398_v12 = vpop.permute.xlu1 %397  ;;  %v665_v44 = vmul.f32 0.2, %v633_v51  ;;  %v667_v48 = vmul.f32 0.2, %v635_v27  ;;  %v664_v17 = vmul.f32 0.2, %v632_v19 }
  0xe1   :  { %v464_v46 = vmul.f32 %v1192_v59, %v398_v12  ;;  %v465_v32 = vmul.f32 %v1194_v60, %v398_v12  ;;  %v466_v22 = vmul.f32 %v1196_v61, %v398_v12  ;;  %v467_v42 = vmul.f32 %v1198_v63, %v398_v12 }
  0xe2   :  { %v1480_v35 = vmax.f32 %v633_v51, %v665_v44  ;;  %v1482_v18 = vmax.f32 %v635_v27, %v667_v48  ;;  %v1484_v28 = vmax.f32 %v632_v19, %v664_v17  ;;  %v666_v30 = vmul.f32 0.2, %v634_v47 }
  0xe3   :  { %v496_v36 = vadd.f32 %v464_v46, %v364_v23  ;;  %v497_v26 = vadd.f32 %v465_v32, %v365_v49  ;;  %v498_v20 = vadd.f32 %v466_v22, %v366_v24  ;;  %v499_v43 = vadd.f32 %v467_v42, %v367_v7 }
  0xe4   :  { %819 = vmatprep.subr.mxu0 %v1480_v35  ;;  %924 = vmatprep.subr.mxu1 %v1482_v18  ;;  %v1488_v37 = vmax.f32 %v634_v47, %v666_v30  ;;  %v158_v7 = vmul.f32 %v1204_v2, %v1420_v25  ;;  %v228_v25 = vadd.f32 %v1433_v14, %v156_v34 }
  0xe5   :  { %v262_v45 = vpop.permute.xlu1 %261  ;;  %820 = vmatpush1.xpose.msra.mxu0 %v1484_v28  ;;  %v629_v12 = vadd.f32 %v597_v39, %v497_v26  ;;  %v631_v29 = vadd.f32 %v599_v62, %v499_v43  ;;  %v628_v48 = vadd.f32 %v596_v50, %v496_v36  ;;  %v630_v16 = vadd.f32 %v598_v8, %v498_v20 }
  0xe6   :  { %925 = vmatpush1.xpose.msra.mxu1 %v1488_v37  ;;  %v328_v62 = vmul.f32 %v1182_v53, %v262_v45  ;;  %v329_v50 = vmul.f32 %v1184_v54, %v262_v45  ;;  %v330_v0 = vmul.f32 %v1186_v55, %v262_v45  ;;  %v331_v8 = vmul.f32 %v1190_v58, %v262_v45 }
  0xe7   :  { %v661_v33 = vmul.f32 0.2, %v629_v12  ;;  %v663_v11 = vmul.f32 0.2, %v631_v29  ;;  %v660_v39 = vmul.f32 0.2, %v628_v48  ;;  %v229_v27 = vadd.f32 %v1433_v14, %v157_v40 }
  0xe8   :  { %v662_v3 = vmul.f32 0.2, %v630_v16  ;;  %v230_v19 = vadd.f32 %v1433_v14, %v158_v7  ;;  %v231_v53 = vadd.f32 %v1433_v14, %v159_v52  ;;  %v748_v14 = vadd.f32 %v1408_v56, %v1412_v9 }
  0xe9   :  { %v1504_v1 = vmax.f32 %v629_v12, %v661_v33  ;;  %v1506_v51 = vmax.f32 %v631_v29, %v663_v11  ;;  %v1508_v2 = vmax.f32 %v628_v48, %v660_v39  ;;  %v361_v44 = vadd.f32 %v329_v50, %v229_v27  ;;  %v1771_v27 = vld [vmem:[#allocation10_spill] sm:$0xff] }
  0xea   :  { %v394_v54 = vpop.permute.xlu1 %393  ;;  %v694_v49 = vmax.f32 %v630_v16, %v662_v3  ;;  %v363_v17 = vadd.f32 %v331_v8, %v231_v53  ;;  %v749_v45 = vadd.f32 %v748_v14, %v1416_v15  ;;  %v758_v12 = vadd.f32 %v1338_v38, %v1342_v21  ;;  %v1778_v14 = vld [vmem:[#allocation2_spill] sm:$0xff] }
  0xeb   :  { %v460_v55 = vmul.f32 %v1192_v59, %v394_v54  ;;  %v461_v58 = vmul.f32 %v1194_v60, %v394_v54  ;;  %v462_v47 = vmul.f32 %v1196_v61, %v394_v54  ;;  %v463_v23 = vmul.f32 %v1198_v63, %v394_v54  ;;  %821 = vmatprep.subr.mxu0 %v1504_v1  ;;  %v1772_v54 = vld [vmem:[#allocation12_spill] sm:$0xff] }
  0xec   :  { %926 = vmatprep.subr.mxu1 %v1506_v51  ;;  %822 = vmatpush1.xpose.msra.mxu0 %v1508_v2  ;;  %v733_v24 = vadd.f32 %v1504_v1, %v1508_v2  ;;  %v360_v59 = vadd.f32 %v328_v62, %v228_v25  ;;  %v362_v60 = vadd.f32 %v330_v0, %v230_v19 }
  0xed   :  { %927 = vmatpush1.xpose.msra.mxu1 %v694_v49  ;;  %v493_v46 = vadd.f32 %v461_v58, %v361_v44  ;;  %v495_v22 = vadd.f32 %v463_v23, %v363_v17  ;;  %v738_v0 = vadd.f32 %v1480_v35, %v1484_v28  ;;  %v743_v19 = vadd.f32 %v1771_v27, %v1426_v31  ;;  %v1773_v58 = vld [vmem:[#allocation8_spill] sm:$0xff]  ;;  %v1781_v44 = vld [vmem:[#allocation3_spill] sm:$0xff] }
  0xee   :  { %v734_v61 = vadd.f32 %v733_v24, %v694_v49  ;;  %v492_v63 = vadd.f32 %v460_v55, %v360_v59  ;;  %v494_v32 = vadd.f32 %v462_v47, %v362_v60  ;;  %v1774_v47 = vld [vmem:[#allocation6_spill] sm:$0xff]  ;;  %v1777_v24 = vld [vmem:[#allocation4_spill] sm:$0xff] }
  0xef   :  { %v526_v42 = vpop.permute.xlu1 %525  ;;  %v739_v25 = vadd.f32 %v738_v0, %v1488_v37  ;;  %v744_v55 = vadd.f32 %v743_v19, %v1772_v54  ;;  %v753_v23 = vadd.f32 %v1774_v47, %v1773_v58  ;;  %v763_v59 = vadd.f32 %v1778_v14, %v1777_v24 }
  0xf0   :  { %v592_v30 = vmul.f32 %v1208_v4, %v526_v42  ;;  %v593_v36 = vmul.f32 %v1210_v5, %v526_v42  ;;  %v594_v26 = vmul.f32 %v1212_v6, %v526_v42  ;;  %v595_v20 = vmul.f32 %v1217_v10, %v526_v42 }
  0xf1   :  { %v735_v43 = vadd.f32 %v734_v61, %v1506_v51  ;;  %v750_v5 = vadd.f32 %v749_v45, %v1410_v57  ;;  %v759_v6 = vadd.f32 %v758_v12, %v1349_v41  ;;  %v740_v53 = vadd.f32 %v739_v25, %v1482_v18  ;;  %v720_v61 = vld [vmem:[%s1734_s3] sm:$0xff]  ;;  %v727_v12 = vld [vmem:[%s1734_s3 + $0x38] sm:$0xff] }
  0xf2   :  { %v625_v29 = vadd.f32 %v593_v36, %v493_v46  ;;  %v627_v48 = vadd.f32 %v595_v20, %v495_v22  ;;  %v626_v16 = vadd.f32 %v594_v26, %v494_v32  ;;  %v624_v34 = vadd.f32 %v592_v30, %v492_v63  ;;  %v722_v32 = vld [vmem:[%s1734_s3 + $0x10] sm:$0xff]  ;;  %v723_v30 = vld [vmem:[%s1734_s3 + $0x18] sm:$0xff]  ;;  %v725_v20 = vld [vmem:[%s1734_s3 + $0x28] sm:$0xff] }
  0xf3   :  { %736 = vadd.xlane.f32.xlu1 %v735_v43  ;;  %v760_v62 = vadd.f32 %v759_v6, %v1340_v13 }
  0xf4   :  { %v657_v40 = vmul.f32 0.2, %v625_v29  ;;  %v659_v4 = vmul.f32 0.2, %v627_v48  ;;  %v658_v7 = vmul.f32 0.2, %v626_v16 }
  0xf5   :  { %v656_v10 = vmul.f32 0.2, %v624_v34 }
  0xf6   :  { %v689_v52 = vmax.f32 %v625_v29, %v657_v40  ;;  %v691_v33 = vmax.f32 %v627_v48, %v659_v4  ;;  %v690_v11 = vmax.f32 %v626_v16, %v658_v7 }
  0xf7   :  { %751 = vadd.xlane.f32.xlu1 %v750_v5  ;;  %v688_v39 = vmax.f32 %v624_v34, %v656_v10 }
  0xf8   :  { %823 = vmatprep.subr.mxu0 %v689_v52  ;;  %857 = vmatprep.mubr.f32.mxu0 %v689_v52 }
  0xf9   :  { %928 = vmatprep.subr.mxu1 %v691_v33  ;;  %962 = vmatprep.mubr.f32.mxu1 %v691_v33  ;;  %v728_v50 = vadd.f32 %v689_v52, %v688_v39 }
  0xfa   :  { %929 = vmatpush1.xpose.msra.mxu1 %v690_v11  ;;  %824 = vmatpush1.xpose.msra.mxu0 %v688_v39 }
  0xfb   :  { %761 = vadd.xlane.f32.xlu1 %v760_v62  ;;  %v729_v8 = vadd.f32 %v728_v50, %v690_v11 }
  0xfd   :  { %858 = vmatmul.mubr.f32.vlgmr.msra.gmra.mxu0 %v688_v39  ;;  %963 = vmatmul.mubr.f32.vlgmr.msra.gmra.mxu1 %v690_v11  ;;  %v730_v3 = vadd.f32 %v729_v8, %v691_v33 }
  0xfe   :  { %862 = vmatprep.mubr.f32.mxu0 %v1504_v1  ;;  %967 = vmatprep.mubr.f32.mxu1 %v1506_v51  ;;  %v1775_v1 = vld [vmem:[#allocation11_spill] sm:$0xff] }
  0xff   :  { %731 = vadd.xlane.f32.xlu0 %v730_v3  ;;  %v745_v51 = vadd.f32 %v744_v55, %v1775_v1 }
 0x101   :  { %863 = vmatmul.mubr.f32.gmra.mxu0 %v1508_v2  ;;  %968 = vmatmul.mubr.f32.gmra.mxu1 %v694_v49  ;;  %v1776_v2 = vld [vmem:[#allocation9_spill] sm:$0xff] }
 0x102   :  { %867 = vmatprep.mubr.f32.mxu0 %v1480_v35  ;;  %972 = vmatprep.mubr.f32.mxu1 %v1482_v18  ;;  %v754_v49 = vadd.f32 %v753_v23, %v1776_v2  ;;  %v1779_v35 = vld [vmem:[#allocation7_spill] sm:$0xff] }
 0x103   :  { %741 = vadd.xlane.f32.xlu0 %v740_v53 }
 0x104   :  { %v755_v18 = vadd.f32 %v754_v49, %v1779_v35 }
 0x105   :  { %868 = vmatmul.mubr.f32.gmra.mxu0 %v1484_v28  ;;  %973 = vmatmul.mubr.f32.gmra.mxu1 %v1488_v37  ;;  %v1780_v28 = vld [vmem:[#allocation5_spill] sm:$0xff] }
 0x106   :  { %872 = vmatprep.mubr.f32.mxu0 %v1771_v27  ;;  %977 = vmatprep.mubr.f32.mxu1 %v1775_v1  ;;  %v764_v37 = vadd.f32 %v763_v59, %v1780_v28 }
 0x107   :  { %746 = vadd.xlane.f32.xlu0 %v745_v51 }
 0x108   :  { %v765_v60 = vadd.f32 %v764_v37, %v1781_v44 }
 0x109   :  { %873 = vmatmul.mubr.f32.gmra.mxu0 %v1426_v31  ;;  %978 = vmatmul.mubr.f32.gmra.mxu1 %v1772_v54 }
 0x10a   :  { %877 = vmatprep.mubr.f32.mxu0 %v1408_v56  ;;  %982 = vmatprep.mubr.f32.mxu1 %v1410_v57  ;;  %v1782_v56 = vmov 0.0  }
 0x10b   :  { %756 = vadd.xlane.f32.xlu0 %v755_v18  ;;  %52 = vst.msk [vmem:[%s1735_s4] sm:$0xff] %vm51_vm1, %v1782_v56  ;;  %53 = vst.msk [vmem:[%s1735_s4 + $0x8] sm:$0xff] %vm51_vm1, %v1782_v56 }
 0x10c   :  { %54 = vst.msk [vmem:[%s1735_s4 + $0x10] sm:$0xff] %vm51_vm1, %v1782_v56  ;;  %55 = vst.msk [vmem:[%s1735_s4 + $0x18] sm:$0xff] %vm51_vm1, %v1782_v56 }
 0x10d   :  { %878 = vmatmul.mubr.f32.gmra.mxu0 %v1412_v9  ;;  %983 = vmatmul.mubr.f32.gmra.mxu1 %v1416_v15  ;;  %56 = vst.msk [vmem:[%s1735_s4 + $0x20] sm:$0xff] %vm51_vm1, %v1782_v56  ;;  %57 = vst.msk [vmem:[%s1735_s4 + $0x28] sm:$0xff] %vm51_vm1, %v1782_v56  ;;  %v726_v15 = vld [vmem:[%s1734_s3 + $0x30] sm:$0xff] }
 0x10e   :  { %882 = vmatprep.mubr.f32.mxu0 %v1774_v47  ;;  %987 = vmatprep.mubr.f32.mxu1 %v1779_v35  ;;  %58 = vst.msk [vmem:[%s1735_s4 + $0x30] sm:$0xff] %vm51_vm1, %v1782_v56  ;;  %59 = vst.msk [vmem:[%s1735_s4 + $0x38] sm:$0xff] %vm51_vm1, %v1782_v56 }
 0x10f   :  { %766 = vadd.xlane.f32.xlu0 %v765_v60 }
 0x111   :  { %883 = vmatmul.mubr.f32.gmra.mxu0 %v1773_v58  ;;  %988 = vmatmul.mubr.f32.gmra.mxu1 %v1776_v2 }
 0x112   :  { %887 = vmatprep.mubr.f32.mxu0 %v1338_v38  ;;  %992 = vmatprep.mubr.f32.mxu1 %v1340_v13  ;;  %v721_v38 = vld [vmem:[%s1734_s3 + $0x8] sm:$0xff]  ;;  %v785_v34 = vld [vmem:[%s1735_s4] sm:$0xff] }
 0x113   :  { %v786_v52 = vld [vmem:[%s1735_s4 + $0x8] sm:$0xff]  ;;  %v787_v8 = vld [vmem:[%s1735_s4 + $0x10] sm:$0xff]  ;;  %v788_v55 = vld [vmem:[%s1735_s4 + $0x18] sm:$0xff] }
 0x114   :  { %v789_v49 = vld [vmem:[%s1735_s4 + $0x20] sm:$0xff]  ;;  %v790_v37 = vld [vmem:[%s1735_s4 + $0x28] sm:$0xff] }
 0x115   :  { %888 = vmatmul.mubr.f32.gmra.mxu0 %v1342_v21  ;;  %993 = vmatmul.mubr.f32.gmra.mxu1 %v1349_v41  ;;  %v724_v41 = vld [vmem:[%s1734_s3 + $0x20] sm:$0xff] }
 0x116   :  { %892 = vmatprep.mubr.f32.mxu0 %v1778_v14  ;;  %997 = vmatprep.mubr.f32.mxu1 %v1781_v44 }
 0x119   :  { %893 = vmatmul.mubr.f32.gmra.mxu0 %v1777_v24  ;;  %998 = vmatmul.mubr.f32.gmra.mxu1 %v1780_v28 }
 0x17c   :  { %v737_v13 = vpop.xlane.xlu1 %736 }
 0x17d   :  { %v769_v21 = vadd.f32 %v737_v13, %v721_v38 }
 0x17f   :  { %778 = vst.msk [vmem:[%s1734_s3 + $0x8] sm:$0xff] %vm42_vm0, %v769_v21 }
 0x180   :  { %v752_v57 = vpop.xlane.xlu1 %751 }
 0x181   :  { %v772_v9 = vadd.f32 %v752_v57, %v724_v41  ;;  %v791_v41 = vld [vmem:[%s1735_s4 + $0x30] sm:$0xff] }
 0x183   :  { %781 = vst.msk [vmem:[%s1734_s3 + $0x20] sm:$0xff] %vm42_vm0, %v772_v9 }
 0x184   :  { %v762_v31 = vpop.xlane.xlu1 %761 }
 0x185   :  { %v774_v17 = vadd.f32 %v762_v31, %v726_v15 }
 0x187   :  { %783 = vst.msk [vmem:[%s1734_s3 + $0x30] sm:$0xff] %vm42_vm0, %v774_v17 }
 0x188   :  { %v732_v63 = vpop.xlane.xlu0 %731 }
 0x189   :  { %v768_v46 = vadd.f32 %v732_v63, %v720_v61  ;;  %v792_v63 = vld [vmem:[%s1735_s4 + $0x38] sm:$0xff] }
 0x18b   :  { %777 = vst.msk [vmem:[%s1734_s3] sm:$0xff] %vm42_vm0, %v768_v46 }
 0x18c   :  { %v742_v22 = vpop.xlane.xlu0 %741 }
 0x18d   :  { %v770_v42 = vadd.f32 %v742_v22, %v722_v32 }
 0x18f   :  { %779 = vst.msk [vmem:[%s1734_s3 + $0x10] sm:$0xff] %vm42_vm0, %v770_v42 }
 0x190   :  { %v747_v36 = vpop.xlane.xlu0 %746 }
 0x191   :  { %v771_v26 = vadd.f32 %v747_v36, %v723_v30 }
 0x193   :  { %780 = vst.msk [vmem:[%s1734_s3 + $0x18] sm:$0xff] %vm42_vm0, %v771_v26 }
 0x194   :  { %v757_v43 = vpop.xlane.xlu0 %756 }
 0x195   :  { %v773_v45 = vadd.f32 %v757_v43, %v725_v20 }
 0x197   :  { %782 = vst.msk [vmem:[%s1734_s3 + $0x28] sm:$0xff] %vm42_vm0, %v773_v45 }
 0x198   :  { %v767_v29 = vpop.xlane.xlu0 %766 }
 0x199   :  { %v775_v48 = vadd.f32 %v767_v29, %v727_v12 }
 0x19b   :  { %784 = vst.msk [vmem:[%s1734_s3 + $0x38] sm:$0xff] %vm42_vm0, %v775_v48 }
 0x1bd   :  { %v859_v16 = vpop.f32.mrf.mxu0  ;;  %v964_v40 = vpop.f32.mrf.mxu1 }
 0x1be   :  { %v965_v4 = vadd.f32 %v964_v40, %v859_v16 }
 0x1bf   :  { %v861_v7 = vpop.f32.mrf.mxu0  ;;  %v966_v5 = vpop.f32.mrf.mxu1 }
 0x1c0   :  { %v1003_v6 = vadd.f32 %v965_v4, %v785_v34 }
 0x1c1   :  { %v864_v10 = vpop.f32.mrf.mxu0  ;;  %v969_v33 = vpop.f32.mrf.mxu1 }
 0x1c2   :  { %1012 = vst.msk [vmem:[%s1735_s4] sm:$0xff] %vm51_vm1, %v1003_v6  ;;  %v970_v11 = vadd.f32 %v969_v33, %v864_v10 }
 0x1c3   :  { %v866_v39 = vpop.f32.mrf.mxu0  ;;  %v971_v62 = vpop.f32.mrf.mxu1 }
 0x1c4   :  { %v1004_v50 = vadd.f32 %v970_v11, %v786_v52 }
 0x1c5   :  { %v869_v0 = vpop.f32.mrf.mxu0  ;;  %v974_v3 = vpop.f32.mrf.mxu1 }
 0x1c6   :  { %1013 = vst.msk [vmem:[%s1735_s4 + $0x8] sm:$0xff] %vm51_vm1, %v1004_v50  ;;  %v975_v25 = vadd.f32 %v974_v3, %v869_v0 }
 0x1c7   :  { %v871_v27 = vpop.f32.mrf.mxu0  ;;  %v976_v19 = vpop.f32.mrf.mxu1 }
 0x1c8   :  { %v1005_v53 = vadd.f32 %v975_v25, %v787_v8 }
 0x1c9   :  { %v874_v54 = vpop.f32.mrf.mxu0  ;;  %v979_v58 = vpop.f32.mrf.mxu1 }
 0x1ca   :  { %1014 = vst.msk [vmem:[%s1735_s4 + $0x10] sm:$0xff] %vm51_vm1, %v1005_v53  ;;  %v980_v47 = vadd.f32 %v979_v58, %v874_v54 }
 0x1cb   :  { %v876_v23 = vpop.f32.mrf.mxu0  ;;  %v981_v1 = vpop.f32.mrf.mxu1 }
 0x1cc   :  { %v1006_v51 = vadd.f32 %v980_v47, %v788_v55 }
 0x1cd   :  { %v879_v2 = vpop.f32.mrf.mxu0  ;;  %v984_v24 = vpop.f32.mrf.mxu1 }
 0x1ce   :  { %1015 = vst.msk [vmem:[%s1735_s4 + $0x18] sm:$0xff] %vm51_vm1, %v1006_v51  ;;  %v985_v14 = vadd.f32 %v984_v24, %v879_v2 }
 0x1cf   :  { %v881_v59 = vpop.f32.mrf.mxu0  ;;  %v986_v35 = vpop.f32.mrf.mxu1 }
 0x1d0   :  { %v1007_v18 = vadd.f32 %v985_v14, %v789_v49 }
 0x1d1   :  { %v884_v28 = vpop.f32.mrf.mxu0  ;;  %v989_v44 = vpop.f32.mrf.mxu1 }
 0x1d2   :  { %1016 = vst.msk [vmem:[%s1735_s4 + $0x20] sm:$0xff] %vm51_vm1, %v1007_v18  ;;  %v990_v60 = vadd.f32 %v989_v44, %v884_v28 }
 0x1d3   :  { %v886_v56 = vpop.f32.mrf.mxu0  ;;  %v991_v38 = vpop.f32.mrf.mxu1 }
 0x1d4   :  { %v1008_v13 = vadd.f32 %v990_v60, %v790_v37 }
 0x1d5   :  { %v889_v21 = vpop.f32.mrf.mxu0  ;;  %v994_v57 = vpop.f32.mrf.mxu1 }
 0x1d6   :  { %1017 = vst.msk [vmem:[%s1735_s4 + $0x28] sm:$0xff] %vm51_vm1, %v1008_v13  ;;  %v995_v9 = vadd.f32 %v994_v57, %v889_v21 }
 0x1d7   :  { %v891_v15 = vpop.f32.mrf.mxu0  ;;  %v996_v31 = vpop.f32.mrf.mxu1 }
 0x1d8   :  { %v1009_v17 = vadd.f32 %v995_v9, %v791_v41 }
 0x1d9   :  { %v894_v61 = vpop.f32.mrf.mxu0  ;;  %v999_v46 = vpop.f32.mrf.mxu1 }
 0x1da   :  { %1018 = vst.msk [vmem:[%s1735_s4 + $0x30] sm:$0xff] %vm51_vm1, %v1009_v17  ;;  %v1000_v32 = vadd.f32 %v999_v46, %v894_v61 }
 0x1db   :  { %v896_v22 = vpop.f32.mrf.mxu0  ;;  %v1001_v42 = vpop.f32.mrf.mxu1 }
 0x1dc   :  { %v1010_v30 = vadd.f32 %v1000_v32, %v792_v63 }
 0x1de   :  { %1019 = vst.msk [vmem:[%s1735_s4 + $0x38] sm:$0xff] %vm51_vm1, %v1010_v30 }

</bundles_post_ra>
